<compile_context>
chip_gen: v5e
topology: v5e:2x2
jax: 0.10.0
libtpu: 0.0.40
codegen_flags: <defaults>
</compile_context>

<pallas_src>
import math

import jax
import jax.numpy as jnp
import numpy as np
from jax.experimental import pallas as pl
from jax.experimental.pallas import tpu as pltpu

BN_EPS = 1e-5


# ----------------------------- fused Pallas kernel ---------------------------

def _make_fused_kernel(cfg):
    NF = cfg["num_frames"]          # number of input frames (4 phases if stride 2)
    F = cfg["frame_size"]           # (Ho+2)*(Wo+2), flattened frame length (lanes)
    Wf = cfg["frame_w"]             # Wo + 2
    cin0 = cfg["cin0"]
    cout = cfg["cout"]
    taps_first = cfg["taps_first"]  # [(frame_idx, flat_shift)] * 9 for block-0 conv1
    taps_s1 = cfg["taps_s1"]        # [(0, flat_shift)] * 9 for every stride-1 conv
    sc_frame, sc_shift = cfg["shortcut"]
    n_generic = cfg["n_generic"]
    first_is_generic = cfg["first_is_generic"]
    prec = jax.lax.Precision.HIGHEST

    def kernel(xf_ref, mph_ref, mint_ref, *refs):
        param_refs = refs[:-3]
        o_ref, p_ref, pad_ref = refs[-3], refs[-2], refs[-1]

        # Scratch hygiene (stale VMEM could only ever reach invalid frame
        # columns, but keep everything finite and deterministic).
        p_ref[...] = jnp.zeros(p_ref.shape, p_ref.dtype)
        pad_ref[...] = jnp.zeros(pad_ref.shape, pad_ref.dtype)

        mint = mint_ref[...]                                    # (1, F) interior mask
        it = iter(param_refs)

        def conv3x3(frames, taps, wmat, cin):
            # frames: list of (cin, F) values, already zero-padded / masked.
            # Build im2col patches with contiguous offset-slice copies, then do
            # one lane-dense MXU dot: (cout, 9*cin) @ (9*cin, F).
            for t, (fi, s) in enumerate(taps):
                p_ref[t * cin:(t + 1) * cin, 0:F - s] = frames[fi][:, s:F]
            patches = p_ref[0:9 * cin, :]
            return jnp.dot(wmat, patches,
                           preferred_element_type=jnp.float32, precision=prec)

        def padded_act(out, scale, shift):
            # out is (cout, F) in output-frame coords (valid data at top-left
            # Ho x Wo).  Return zero-padded relu(out*scale+shift) as a (cout, F)
            # flat frame: interior column m holds relu(bn(out[m - Wf - 1])).
            a = jnp.maximum(out[:, 0:F - Wf - 1] * scale + shift, 0.0)
            pad_ref[:, Wf + 1:F] = jnp.where(mint[:, Wf + 1:F] > 0.0, a, 0.0)
            return pad_ref[...]

        if first_is_generic:
            # First block has Cin == Cout and stride 1: identity residual on raw
            # x, which glue placed directly in output-frame coordinates.
            y = xf_ref[...][0]
        else:
            # ---- first BasicBlock: bn/relu -> conv3x3(stride) -> bn/relu ->
            #      conv3x3 -> + conv1x1(stride) shortcut on relu(bn1(x)) -------
            w1m = next(it)[...]
            w2m = next(it)[...]
            wsm = next(it)[...]
            s1 = next(it)[...]
            b1 = next(it)[...]
            s2 = next(it)[...]
            b2 = next(it)[...]
            xf = xf_ref[...]                                    # (NF, cin0, F)
            mph = mph_ref[...]                                  # (NF, F)
            # a1 = relu(bn1(x)) on every frame; masked so padding stays zero.
            frames = [
                jnp.where(mph[f:f + 1, :] > 0.0,
                          jnp.maximum(xf[f] * s1 + b1, 0.0), 0.0)
                for f in range(NF)
            ]
            out1 = conv3x3(frames, taps_first, w1m, cin0)       # (cout, F)
            out2 = conv3x3([padded_act(out1, s2, b2)], taps_s1, w2m, cout)
            if sc_shift == 0:
                sc_in = frames[sc_frame]
            else:
                p_ref[0:cin0, 0:F - sc_shift] = frames[sc_frame][:, sc_shift:F]
                sc_in = p_ref[0:cin0, :]
            y = out2 + jnp.dot(wsm, sc_in,
                               preferred_element_type=jnp.float32, precision=prec)

        # ---- remaining BasicBlocks: stride 1, identity shortcut --------------
        for _ in range(n_generic):
            w1m = next(it)[...]
            w2m = next(it)[...]
            s1 = next(it)[...]
            b1 = next(it)[...]
            s2 = next(it)[...]
            b2 = next(it)[...]
            out1 = conv3x3([padded_act(y, s1, b1)], taps_s1, w1m, cout)
            out2 = conv3x3([padded_act(out1, s2, b2)], taps_s1, w2m, cout)
            y = y + out2

        o_ref[...] = y.astype(o_ref.dtype)

    return kernel


# ------------------------------ wrapper / glue --------------------------------

def _prep_block(p):
    """Fold weights into matmul-ready layouts for the fused kernel."""
    w1 = p["w1"]
    cin, cout = w1.shape[2], w1.shape[3]
    d = dict(
        w1m=w1.reshape(9 * cin, cout).T,                        # (cout, 9*cin)
        w2m=p["w2"].reshape(9 * cout, cout).T,                  # (cout, 9*cout)
        s1=p["scale1"].reshape(cin, 1),
        b1=p["shift1"].reshape(cin, 1),
        s2=p["scale2"].reshape(cout, 1),
        b2=p["shift2"].reshape(cout, 1),
    )
    if not p["equal_in_out"]:
        d["wsm"] = p["ws"].T                                    # (cout, cin)
    return d


def make_network_block_forward(block_params, N, H, W):
    """Build a jitted forward(x_nchw)->y_nchw: whole NetworkBlock, one pallas_call."""
    p0 = block_params[0]
    stride = p0["stride"]
    cin0, cout = p0["w1"].shape[2], p0["w1"].shape[3]
    assert stride in (1, 2)
    if stride == 2:
        assert H % 2 == 0 and W % 2 == 0
    for p in block_params[1:]:
        assert p["stride"] == 1 and p["equal_in_out"], \
            "NetworkBlock: blocks after the first are stride-1 with equal in/out"

    Ho = (H + 2 - 3) // stride + 1
    Wo = (W + 2 - 3) // stride + 1
    Hf, Wf = Ho + 2, Wo + 2
    F = Hf * Wf

    first_is_generic = p0["equal_in_out"]
    if first_is_generic:
        assert stride == 1 and cin0 == cout
    NF = 4 if (stride == 2 and not first_is_generic) else 1

    taps_s1 = [(0, kh * Wf + kw) for kh in range(3) for kw in range(3)]
    if first_is_generic:
        taps_first, shortcut = None, (0, 0)
    elif stride == 2:
        # phase decomposition: tap (kh,kw) reads phase (kh%2, kw%2) shifted by
        # (kh//2, kw//2) inside its padded 9x9 frame.
        taps_first = [((kh % 2) * 2 + (kw % 2), (kh // 2) * Wf + (kw // 2))
                      for kh in range(3) for kw in range(3)]
        shortcut = (3, 0)        # even/even phase is already in output coords
    else:
        taps_first = list(taps_s1)
        shortcut = (0, Wf + 1)

    # Static 0/1 masks marking where real data lives inside each padded frame.
    mask_int = np.zeros((Hf, Wf), np.float32)
    mask_int[1:Ho + 1, 1:Wo + 1] = 1.0
    mask_int = jnp.asarray(mask_int.reshape(1, F))

    mask_ph = np.zeros((NF, Hf, Wf), np.float32)
    if not first_is_generic:
        if stride == 2:
            mask_ph[0, 1:Ho + 1, 1:Wo + 1] = 1.0
            mask_ph[1, 1:Ho + 1, 0:Wo] = 1.0
            mask_ph[2, 0:Ho, 1:Wo + 1] = 1.0
            mask_ph[3, 0:Ho, 0:Wo] = 1.0
        else:
            mask_ph[0, 1:Ho + 1, 1:Wo + 1] = 1.0
    mask_ph = jnp.asarray(mask_ph.reshape(NF, F))

    prepped = [_prep_block(p) for p in block_params]
    flat_params = []
    if first_is_generic:
        generic = prepped
    else:
        d = prepped[0]
        flat_params += [d["w1m"], d["w2m"], d["wsm"],
                        d["s1"], d["b1"], d["s2"], d["b2"]]
        generic = prepped[1:]
    for d in generic:
        flat_params += [d["w1m"], d["w2m"], d["s1"], d["b1"], d["s2"], d["b2"]]

    cfg = dict(num_frames=NF, frame_size=F, frame_w=Wf, cin0=cin0, cout=cout,
               taps_first=taps_first, taps_s1=taps_s1, shortcut=shortcut,
               n_generic=len(generic), first_is_generic=first_is_generic)
    kernel = _make_fused_kernel(cfg)

    in_specs = [
        pl.BlockSpec((None, NF, cin0, F), lambda n: (n, 0, 0, 0)),   # x frames
        pl.BlockSpec((NF, F), lambda n: (0, 0)),                     # phase masks
        pl.BlockSpec((1, F), lambda n: (0, 0)),                      # interior mask
    ]
    for a in flat_params:
        in_specs.append(pl.BlockSpec(a.shape, lambda n, nd=a.ndim: (0,) * nd))

    cmax = max(cin0, cout)
    fused = pl.pallas_call(
        kernel,
        out_shape=jax.ShapeDtypeStruct((N, cout, F), jnp.float32),
        grid=(N,),
        in_specs=in_specs,
        out_specs=pl.BlockSpec((None, cout, F), lambda n: (n, 0, 0)),
        scratch_shapes=[pltpu.VMEM((9 * cmax, F), jnp.float32),   # im2col patches
                        pltpu.VMEM((cout, F), jnp.float32)],      # padded activation
        compiler_params=pltpu.CompilerParams(
            dimension_semantics=("parallel",)),
    )

    def forward(x_nchw):
        x = x_nchw.astype(jnp.float32)
        # Pure layout glue: place x (or its 4 stride-2 phases) inside zeroed
        # flat frames; replaces the old jnp.pad + NCHW<->NHWC round trips.
        xf = jnp.zeros((N, NF, cin0, Hf, Wf), jnp.float32)
        if first_is_generic:
            xf = xf.at[:, 0, :, 0:Ho, 0:Wo].set(x)
        elif stride == 2:
            xf = xf.at[:, 0, :, 1:Ho + 1, 1:Wo + 1].set(x[:, :, 1::2, 1::2])
            xf = xf.at[:, 1, :, 1:Ho + 1, 0:Wo].set(x[:, :, 1::2, 0::2])
            xf = xf.at[:, 2, :, 0:Ho, 1:Wo + 1].set(x[:, :, 0::2, 1::2])
            xf = xf.at[:, 3, :, 0:Ho, 0:Wo].set(x[:, :, 0::2, 0::2])
        else:
            xf = xf.at[:, 0, :, 1:Ho + 1, 1:Wo + 1].set(x)
        xf = xf.reshape(N, NF, cin0, F)
        y = fused(xf, mask_ph, mask_int, *flat_params)          # (N, cout, F)
        # valid conv outputs live in the top-left Ho x Wo of every frame.
        return y.reshape(N, cout, Hf, Wf)[:, :, 0:Ho, 0:Wo]     # NCHW

    return jax.jit(forward)


# ------------------------------ parameter init --------------------------------

def _fold_bn(gamma, beta, mean, var):
    scale = gamma / jnp.sqrt(var + BN_EPS)
    shift = beta - mean * scale
    return scale, shift


def init_basic_block(key, in_planes, out_planes, stride):
    ks = jax.random.split(key, 11)
    equal_in_out = in_planes == out_planes

    def conv_init(k, shape):
        # WideResNet init: N(0, sqrt(2 / (kh*kw*out_channels)))
        n = shape[0] * shape[1] * shape[-1] if len(shape) == 4 else shape[-1]
        return jax.random.normal(k, shape, jnp.float32) * math.sqrt(2.0 / n)

    w1 = conv_init(ks[0], (3, 3, in_planes, out_planes))
    w2 = conv_init(ks[1], (3, 3, out_planes, out_planes))
    g1 = 1.0 + 0.1 * jax.random.normal(ks[2], (in_planes,), jnp.float32)
    b1 = 0.1 * jax.random.normal(ks[3], (in_planes,), jnp.float32)
    m1 = 0.1 * jax.random.normal(ks[4], (in_planes,), jnp.float32)
    v1 = jnp.abs(jax.random.normal(ks[5], (in_planes,), jnp.float32)) + 0.5
    g2 = 1.0 + 0.1 * jax.random.normal(ks[6], (out_planes,), jnp.float32)
    b2 = 0.1 * jax.random.normal(ks[7], (out_planes,), jnp.float32)
    m2 = 0.1 * jax.random.normal(ks[8], (out_planes,), jnp.float32)
    v2 = jnp.abs(jax.random.normal(ks[9], (out_planes,), jnp.float32)) + 0.5
    scale1, shift1 = _fold_bn(g1, b1, m1, v1)
    scale2, shift2 = _fold_bn(g2, b2, m2, v2)
    p = dict(stride=stride, equal_in_out=equal_in_out,
             w1=w1, w2=w2, scale1=scale1, shift1=shift1,
             scale2=scale2, shift2=shift2)
    if not equal_in_out:
        p["ws"] = conv_init(ks[10], (in_planes, out_planes))    # 1x1 conv (Cin,Cout)
    return p


def init_network_block(key, nb_layers, in_planes, out_planes, stride):
    blocks = []
    for i in range(int(nb_layers)):
        blocks.append(init_basic_block(
            jax.random.fold_in(key, i),
            in_planes if i == 0 else out_planes,
            out_planes,
            stride if i == 0 else 1))
    return blocks


# ----------------------------- pure-JAX reference ------------------------------

def _conv_ref(x, w, stride, padding):
    return jax.lax.conv_general_dilated(
        x, w, (stride, stride), padding,
        dimension_numbers=("NHWC", "HWIO", "NHWC"),
        precision=jax.lax.Precision.HIGHEST)


def basic_block_ref(x, p):
    a1 = jnp.maximum(x * p["scale1"] + p["shift1"], 0.0)
    out = _conv_ref(a1, p["w1"], p["stride"], ((1, 1), (1, 1)))
    a2 = jnp.maximum(out * p["scale2"] + p["shift2"], 0.0)
    out = _conv_ref(a2, p["w2"], 1, ((1, 1), (1, 1)))
    if p["equal_in_out"]:
        return x + out
    ws = p["ws"].reshape(1, 1, *p["ws"].shape)
    return _conv_ref(a1, ws, p["stride"], "VALID") + out


def network_block_ref(x, block_params):
    for p in block_params:
        x = basic_block_ref(x, p)
    return x


# ----------------------------------- main --------------------------------------

if __name__ == "__main__":
    key = jax.random.PRNGKey(0)
    k_x, k_p = jax.random.split(key)

    # NetworkBlock(nb_layers=2, in_planes=4, out_planes=8, block=BasicBlock,
    #              stride=2, dropRate=0.3) applied to a PyTorch-style NCHW input.
    N, C, H, W = 2, 4, 16, 16
    x_nchw = jax.random.normal(k_x, (N, C, H, W), jnp.float32)
    params = init_network_block(k_p, nb_layers=2, in_planes=4, out_planes=8,
                                stride=2)

    forward = make_network_block_forward(params, N, H, W)
    y = forward(x_nchw)                                         # NCHW output
    jax.block_until_ready(y)

    x_nhwc = jnp.transpose(x_nchw, (0, 2, 3, 1))
    y_ref = jnp.transpose(network_block_ref(x_nhwc, params), (0, 3, 1, 2))
    assert y.shape == (N, 8, H // 2, W // 2), y.shape
    err = float(jnp.max(jnp.abs(y - y_ref)))
    assert jnp.allclose(y, y_ref, atol=2e-2, rtol=2e-2), err
    print("KERNEL_OK")
</pallas_src>

<mosaic_0001>
module attributes {stable_mosaic.version = 11 : i64} {
  func.func @kernel(%arg0: i32, %arg1: memref<1x4x4x100xf32, #tpu.memory_space<vmem>>, %arg2: memref<4x100xf32, #tpu.memory_space<vmem>>, %arg3: memref<1x100xf32, #tpu.memory_space<vmem>>, %arg4: memref<8x36xf32, #tpu.memory_space<vmem>>, %arg5: memref<8x72xf32, #tpu.memory_space<vmem>>, %arg6: memref<8x4xf32, #tpu.memory_space<vmem>>, %arg7: memref<4x1xf32, #tpu.memory_space<vmem>>, %arg8: memref<4x1xf32, #tpu.memory_space<vmem>>, %arg9: memref<8x1xf32, #tpu.memory_space<vmem>>, %arg10: memref<8x1xf32, #tpu.memory_space<vmem>>, %arg11: memref<8x72xf32, #tpu.memory_space<vmem>>, %arg12: memref<8x72xf32, #tpu.memory_space<vmem>>, %arg13: memref<8x1xf32, #tpu.memory_space<vmem>>, %arg14: memref<8x1xf32, #tpu.memory_space<vmem>>, %arg15: memref<8x1xf32, #tpu.memory_space<vmem>>, %arg16: memref<8x1xf32, #tpu.memory_space<vmem>>, %arg17: memref<1x8x100xf32, #tpu.memory_space<vmem>>, %arg18: memref<72x100xf32, #tpu.memory_space<vmem>>, %arg19: memref<8x100xf32, #tpu.memory_space<vmem>>) attributes {dimension_semantics = [#tpu.dimension_semantics<parallel>], iteration_bounds = array<i64: 2>, scalar_prefetch = 0 : i64, scratch_operands = 2 : i64, tpu.core_type = #tpu.core_type<tc>, window_params = [{transform_indices = @transform_0, window_bounds = array<i64: 1, 4, 4, 100>}, {pipeline_mode = #tpu.pipeline_mode<synchronous>, transform_indices = @transform_1, window_bounds = array<i64: 4, 100>}, {pipeline_mode = #tpu.pipeline_mode<synchronous>, transform_indices = @transform_2, window_bounds = array<i64: 1, 100>}, {pipeline_mode = #tpu.pipeline_mode<synchronous>, transform_indices = @transform_3, window_bounds = array<i64: 8, 36>}, {pipeline_mode = #tpu.pipeline_mode<synchronous>, transform_indices = @transform_4, window_bounds = array<i64: 8, 72>}, {pipeline_mode = #tpu.pipeline_mode<synchronous>, transform_indices = @transform_5, window_bounds = array<i64: 8, 4>}, {pipeline_mode = #tpu.pipeline_mode<synchronous>, transform_indices = @transform_6, window_bounds = array<i64: 4, 1>}, {pipeline_mode = #tpu.pipeline_mode<synchronous>, transform_indices = @transform_7, window_bounds = array<i64: 4, 1>}, {pipeline_mode = #tpu.pipeline_mode<synchronous>, transform_indices = @transform_8, window_bounds = array<i64: 8, 1>}, {pipeline_mode = #tpu.pipeline_mode<synchronous>, transform_indices = @transform_9, window_bounds = array<i64: 8, 1>}, {pipeline_mode = #tpu.pipeline_mode<synchronous>, transform_indices = @transform_10, window_bounds = array<i64: 8, 72>}, {pipeline_mode = #tpu.pipeline_mode<synchronous>, transform_indices = @transform_11, window_bounds = array<i64: 8, 72>}, {pipeline_mode = #tpu.pipeline_mode<synchronous>, transform_indices = @transform_12, window_bounds = array<i64: 8, 1>}, {pipeline_mode = #tpu.pipeline_mode<synchronous>, transform_indices = @transform_13, window_bounds = array<i64: 8, 1>}, {pipeline_mode = #tpu.pipeline_mode<synchronous>, transform_indices = @transform_14, window_bounds = array<i64: 8, 1>}, {pipeline_mode = #tpu.pipeline_mode<synchronous>, transform_indices = @transform_15, window_bounds = array<i64: 8, 1>}, {transform_indices = @transform_16, window_bounds = array<i64: 1, 8, 100>}]} {
    %cst = arith.constant 0.000000e+00 : f32
    %0 = vector.broadcast %cst : f32 to vector<72x100xf32>
    %c0 = arith.constant 0 : index
    %c0_0 = arith.constant 0 : index
    %1 = vector.load %arg18[%c0, %c0_0] : memref<72x100xf32, #tpu.memory_space<vmem>>, vector<72x100xf32>
    tpu.vector_store %arg18[%c0, %c0_0], %0 {strides = array<i32>} : memref<72x100xf32, #tpu.memory_space<vmem>>, vector<72x100xf32>,
    %cst_1 = arith.constant 0.000000e+00 : f32
    %2 = vector.broadcast %cst_1 : f32 to vector<8x100xf32>
    %c0_2 = arith.constant 0 : index
    %c0_3 = arith.constant 0 : index
    %3 = vector.load %arg19[%c0_2, %c0_3] : memref<8x100xf32, #tpu.memory_space<vmem>>, vector<8x100xf32>
    tpu.vector_store %arg19[%c0_2, %c0_3], %2 {strides = array<i32>} : memref<8x100xf32, #tpu.memory_space<vmem>>, vector<8x100xf32>,
    %c0_4 = arith.constant 0 : index
    %c0_5 = arith.constant 0 : index
    %4 = vector.load %arg3[%c0_4, %c0_5] : memref<1x100xf32, #tpu.memory_space<vmem>>, vector<1x100xf32>
    %c0_6 = arith.constant 0 : index
    %c0_7 = arith.constant 0 : index
    %5 = vector.load %arg4[%c0_6, %c0_7] : memref<8x36xf32, #tpu.memory_space<vmem>>, vector<8x36xf32>
    %c0_8 = arith.constant 0 : index
    %c0_9 = arith.constant 0 : index
    %6 = vector.load %arg5[%c0_8, %c0_9] : memref<8x72xf32, #tpu.memory_space<vmem>>, vector<8x72xf32>
    %c0_10 = arith.constant 0 : index
    %c0_11 = arith.constant 0 : index
    %7 = vector.load %arg6[%c0_10, %c0_11] : memref<8x4xf32, #tpu.memory_space<vmem>>, vector<8x4xf32>
    %c0_12 = arith.constant 0 : index
    %c0_13 = arith.constant 0 : index
    %8 = vector.load %arg7[%c0_12, %c0_13] : memref<4x1xf32, #tpu.memory_space<vmem>>, vector<4x1xf32>
    %c0_14 = arith.constant 0 : index
    %c0_15 = arith.constant 0 : index
    %9 = vector.load %arg8[%c0_14, %c0_15] : memref<4x1xf32, #tpu.memory_space<vmem>>, vector<4x1xf32>
    %c0_16 = arith.constant 0 : index
    %c0_17 = arith.constant 0 : index
    %10 = vector.load %arg9[%c0_16, %c0_17] : memref<8x1xf32, #tpu.memory_space<vmem>>, vector<8x1xf32>
    %c0_18 = arith.constant 0 : index
    %c0_19 = arith.constant 0 : index
    %11 = vector.load %arg10[%c0_18, %c0_19] : memref<8x1xf32, #tpu.memory_space<vmem>>, vector<8x1xf32>
    %c0_20 = arith.constant 0 : index
    %c0_21 = arith.constant 0 : index
    %c0_22 = arith.constant 0 : index
    %c0_23 = arith.constant 0 : index
    %12 = vector.load %arg1[%c0_20, %c0_21, %c0_22, %c0_23] : memref<1x4x4x100xf32, #tpu.memory_space<vmem>>, vector<1x4x4x100xf32>
    %13 = vector.shape_cast %12 : vector<1x4x4x100xf32> to vector<4x4x100xf32>
    %c0_24 = arith.constant 0 : index
    %c0_25 = arith.constant 0 : index
    %14 = vector.load %arg2[%c0_24, %c0_25] : memref<4x100xf32, #tpu.memory_space<vmem>>, vector<4x100xf32>
    %15 = vector.extract_strided_slice %14 {offsets = [0, 0], sizes = [1, 100], strides = [1, 1]} : vector<4x100xf32> to vector<1x100xf32>
    %cst_26 = arith.constant 0.000000e+00 : f32
    %16 = vector.broadcast %cst_26 : f32 to vector<1x100xf32>
    %17 = arith.cmpf ogt, %15, %16 : vector<1x100xf32>
    %18 = vector.extract_strided_slice %13 {offsets = [0, 0, 0], sizes = [1, 4, 100], strides = [1, 1, 1]} : vector<4x4x100xf32> to vector<1x4x100xf32>
    %19 = vector.shape_cast %18 : vector<1x4x100xf32> to vector<4x100xf32>
    %20 = vector.broadcast %8 : vector<4x1xf32> to vector<4x100xf32>
    %21 = arith.mulf %19, %20 : vector<4x100xf32>
    %22 = vector.broadcast %9 : vector<4x1xf32> to vector<4x100xf32>
    %23 = arith.addf %21, %22 : vector<4x100xf32>
    %cst_27 = arith.constant 0.000000e+00 : f32
    %24 = vector.broadcast %cst_27 : f32 to vector<4x100xf32>
    %25 = arith.maximumf %23, %24 : vector<4x100xf32>
    %cst_28 = arith.constant 0.000000e+00 : f32
    %26 = vector.shape_cast %17 : vector<1x100xi1> to vector<1x100xi1>
    %27 = vector.broadcast %26 : vector<1x100xi1> to vector<4x100xi1>
    %28 = vector.broadcast %cst_28 : f32 to vector<4x100xf32>
    %29 = arith.select %27, %25, %28 : vector<4x100xi1>, vector<4x100xf32>
    %30 = vector.extract_strided_slice %14 {offsets = [1, 0], sizes = [1, 100], strides = [1, 1]} : vector<4x100xf32> to vector<1x100xf32>
    %cst_29 = arith.constant 0.000000e+00 : f32
    %31 = vector.broadcast %cst_29 : f32 to vector<1x100xf32>
    %32 = arith.cmpf ogt, %30, %31 : vector<1x100xf32>
    %33 = vector.extract_strided_slice %13 {offsets = [1, 0, 0], sizes = [1, 4, 100], strides = [1, 1, 1]} : vector<4x4x100xf32> to vector<1x4x100xf32>
    %34 = vector.shape_cast %33 : vector<1x4x100xf32> to vector<4x100xf32>
    %35 = vector.broadcast %8 : vector<4x1xf32> to vector<4x100xf32>
    %36 = arith.mulf %34, %35 : vector<4x100xf32>
    %37 = vector.broadcast %9 : vector<4x1xf32> to vector<4x100xf32>
    %38 = arith.addf %36, %37 : vector<4x100xf32>
    %cst_30 = arith.constant 0.000000e+00 : f32
    %39 = vector.broadcast %cst_30 : f32 to vector<4x100xf32>
    %40 = arith.maximumf %38, %39 : vector<4x100xf32>
    %cst_31 = arith.constant 0.000000e+00 : f32
    %41 = vector.shape_cast %32 : vector<1x100xi1> to vector<1x100xi1>
    %42 = vector.broadcast %41 : vector<1x100xi1> to vector<4x100xi1>
    %43 = vector.broadcast %cst_31 : f32 to vector<4x100xf32>
    %44 = arith.select %42, %40, %43 : vector<4x100xi1>, vector<4x100xf32>
    %45 = vector.extract_strided_slice %14 {offsets = [2, 0], sizes = [1, 100], strides = [1, 1]} : vector<4x100xf32> to vector<1x100xf32>
    %cst_32 = arith.constant 0.000000e+00 : f32
    %46 = vector.broadcast %cst_32 : f32 to vector<1x100xf32>
    %47 = arith.cmpf ogt, %45, %46 : vector<1x100xf32>
    %48 = vector.extract_strided_slice %13 {offsets = [2, 0, 0], sizes = [1, 4, 100], strides = [1, 1, 1]} : vector<4x4x100xf32> to vector<1x4x100xf32>
    %49 = vector.shape_cast %48 : vector<1x4x100xf32> to vector<4x100xf32>
    %50 = vector.broadcast %8 : vector<4x1xf32> to vector<4x100xf32>
    %51 = arith.mulf %49, %50 : vector<4x100xf32>
    %52 = vector.broadcast %9 : vector<4x1xf32> to vector<4x100xf32>
    %53 = arith.addf %51, %52 : vector<4x100xf32>
    %cst_33 = arith.constant 0.000000e+00 : f32
    %54 = vector.broadcast %cst_33 : f32 to vector<4x100xf32>
    %55 = arith.maximumf %53, %54 : vector<4x100xf32>
    %cst_34 = arith.constant 0.000000e+00 : f32
    %56 = vector.shape_cast %47 : vector<1x100xi1> to vector<1x100xi1>
    %57 = vector.broadcast %56 : vector<1x100xi1> to vector<4x100xi1>
    %58 = vector.broadcast %cst_34 : f32 to vector<4x100xf32>
    %59 = arith.select %57, %55, %58 : vector<4x100xi1>, vector<4x100xf32>
    %60 = vector.extract_strided_slice %14 {offsets = [3, 0], sizes = [1, 100], strides = [1, 1]} : vector<4x100xf32> to vector<1x100xf32>
    %cst_35 = arith.constant 0.000000e+00 : f32
    %61 = vector.broadcast %cst_35 : f32 to vector<1x100xf32>
    %62 = arith.cmpf ogt, %60, %61 : vector<1x100xf32>
    %63 = vector.extract_strided_slice %13 {offsets = [3, 0, 0], sizes = [1, 4, 100], strides = [1, 1, 1]} : vector<4x4x100xf32> to vector<1x4x100xf32>
    %64 = vector.shape_cast %63 : vector<1x4x100xf32> to vector<4x100xf32>
    %65 = vector.broadcast %8 : vector<4x1xf32> to vector<4x100xf32>
    %66 = arith.mulf %64, %65 : vector<4x100xf32>
    %67 = vector.broadcast %9 : vector<4x1xf32> to vector<4x100xf32>
    %68 = arith.addf %66, %67 : vector<4x100xf32>
    %cst_36 = arith.constant 0.000000e+00 : f32
    %69 = vector.broadcast %cst_36 : f32 to vector<4x100xf32>
    %70 = arith.maximumf %68, %69 : vector<4x100xf32>
    %cst_37 = arith.constant 0.000000e+00 : f32
    %71 = vector.shape_cast %62 : vector<1x100xi1> to vector<1x100xi1>
    %72 = vector.broadcast %71 : vector<1x100xi1> to vector<4x100xi1>
    %73 = vector.broadcast %cst_37 : f32 to vector<4x100xf32>
    %74 = arith.select %72, %70, %73 : vector<4x100xi1>, vector<4x100xf32>
    %c0_38 = arith.constant 0 : index
    %c0_39 = arith.constant 0 : index
    %75 = vector.load %arg18[%c0_38, %c0_39] : memref<72x100xf32, #tpu.memory_space<vmem>>, vector<4x100xf32>
    tpu.vector_store %arg18[%c0_38, %c0_39], %29 {strides = array<i32>} : memref<72x100xf32, #tpu.memory_space<vmem>>, vector<4x100xf32>,
    %c4 = arith.constant 4 : index
    %c0_40 = arith.constant 0 : index
    %76 = vector.load %arg18[%c4, %c0_40] : memref<72x100xf32, #tpu.memory_space<vmem>>, vector<4x100xf32>
    tpu.vector_store %arg18[%c4, %c0_40], %44 {strides = array<i32>} : memref<72x100xf32, #tpu.memory_space<vmem>>, vector<4x100xf32>,
    %77 = vector.extract_strided_slice %29 {offsets = [0, 1], sizes = [4, 99], strides = [1, 1]} : vector<4x100xf32> to vector<4x99xf32>
    %c8 = arith.constant 8 : index
    %c0_41 = arith.constant 0 : index
    %78 = vector.load %arg18[%c8, %c0_41] : memref<72x100xf32, #tpu.memory_space<vmem>>, vector<4x99xf32>
    tpu.vector_store %arg18[%c8, %c0_41], %77 {strides = array<i32>} : memref<72x100xf32, #tpu.memory_space<vmem>>, vector<4x99xf32>,
    %c12 = arith.constant 12 : index
    %c0_42 = arith.constant 0 : index
    %79 = vector.load %arg18[%c12, %c0_42] : memref<72x100xf32, #tpu.memory_space<vmem>>, vector<4x100xf32>
    tpu.vector_store %arg18[%c12, %c0_42], %59 {strides = array<i32>} : memref<72x100xf32, #tpu.memory_space<vmem>>, vector<4x100xf32>,
    %c16 = arith.constant 16 : index
    %c0_43 = arith.constant 0 : index
    %80 = vector.load %arg18[%c16, %c0_43] : memref<72x100xf32, #tpu.memory_space<vmem>>, vector<4x100xf32>
    tpu.vector_store %arg18[%c16, %c0_43], %74 {strides = array<i32>} : memref<72x100xf32, #tpu.memory_space<vmem>>, vector<4x100xf32>,
    %81 = vector.extract_strided_slice %59 {offsets = [0, 1], sizes = [4, 99], strides = [1, 1]} : vector<4x100xf32> to vector<4x99xf32>
    %c20 = arith.constant 20 : index
    %c0_44 = arith.constant 0 : index
    %82 = vector.load %arg18[%c20, %c0_44] : memref<72x100xf32, #tpu.memory_space<vmem>>, vector<4x99xf32>
    tpu.vector_store %arg18[%c20, %c0_44], %81 {strides = array<i32>} : memref<72x100xf32, #tpu.memory_space<vmem>>, vector<4x99xf32>,
    %83 = vector.extract_strided_slice %29 {offsets = [0, 10], sizes = [4, 90], strides = [1, 1]} : vector<4x100xf32> to vector<4x90xf32>
    %c24 = arith.constant 24 : index
    %c0_45 = arith.constant 0 : index
    %84 = vector.load %arg18[%c24, %c0_45] : memref<72x100xf32, #tpu.memory_space<vmem>>, vector<4x90xf32>
    tpu.vector_store %arg18[%c24, %c0_45], %83 {strides = array<i32>} : memref<72x100xf32, #tpu.memory_space<vmem>>, vector<4x90xf32>,
    %85 = vector.extract_strided_slice %44 {offsets = [0, 10], sizes = [4, 90], strides = [1, 1]} : vector<4x100xf32> to vector<4x90xf32>
    %c28 = arith.constant 28 : index
    %c0_46 = arith.constant 0 : index
    %86 = vector.load %arg18[%c28, %c0_46] : memref<72x100xf32, #tpu.memory_space<vmem>>, vector<4x90xf32>
    tpu.vector_store %arg18[%c28, %c0_46], %85 {strides = array<i32>} : memref<72x100xf32, #tpu.memory_space<vmem>>, vector<4x90xf32>,
    %87 = vector.extract_strided_slice %29 {offsets = [0, 11], sizes = [4, 89], strides = [1, 1]} : vector<4x100xf32> to vector<4x89xf32>
    %c32 = arith.constant 32 : index
    %c0_47 = arith.constant 0 : index
    %88 = vector.load %arg18[%c32, %c0_47] : memref<72x100xf32, #tpu.memory_space<vmem>>, vector<4x89xf32>
    tpu.vector_store %arg18[%c32, %c0_47], %87 {strides = array<i32>} : memref<72x100xf32, #tpu.memory_space<vmem>>, vector<4x89xf32>,
    %c0_48 = arith.constant 0 : index
    %c0_49 = arith.constant 0 : index
    %89 = vector.load %arg18[%c0_48, %c0_49] : memref<72x100xf32, #tpu.memory_space<vmem>>, vector<36x100xf32>
    %cst_50 = arith.constant dense<0.000000e+00> : vector<8x100xf32>
    %90 = tpu.matmul %5, %89, %cst_50 {dimension_numbers = #tpu.dot_dimension_numbers<[1], [0], [0], [1], [0, 0, 1, 1], [], []>, precision = #tpu.contract_precision<fp32>} : vector<8x36xf32>, vector<36x100xf32>, vector<8x100xf32> -> vector<8x100xf32>
    %91 = vector.extract_strided_slice %90 {offsets = [0, 0], sizes = [8, 89], strides = [1, 1]} : vector<8x100xf32> to vector<8x89xf32>
    %92 = vector.broadcast %10 : vector<8x1xf32> to vector<8x89xf32>
    %93 = arith.mulf %91, %92 : vector<8x89xf32>
    %94 = vector.broadcast %11 : vector<8x1xf32> to vector<8x89xf32>
    %95 = arith.addf %93, %94 : vector<8x89xf32>
    %cst_51 = arith.constant 0.000000e+00 : f32
    %96 = vector.broadcast %cst_51 : f32 to vector<8x89xf32>
    %97 = arith.maximumf %95, %96 : vector<8x89xf32>
    %98 = vector.extract_strided_slice %4 {offsets = [0, 11], sizes = [1, 89], strides = [1, 1]} : vector<1x100xf32> to vector<1x89xf32>
    %cst_52 = arith.constant 0.000000e+00 : f32
    %99 = vector.broadcast %cst_52 : f32 to vector<1x89xf32>
    %100 = arith.cmpf ogt, %98, %99 : vector<1x89xf32>
    %cst_53 = arith.constant 0.000000e+00 : f32
    %101 = vector.shape_cast %100 : vector<1x89xi1> to vector<1x89xi1>
    %102 = vector.broadcast %101 : vector<1x89xi1> to vector<8x89xi1>
    %103 = vector.broadcast %cst_53 : f32 to vector<8x89xf32>
    %104 = arith.select %102, %97, %103 : vector<8x89xi1>, vector<8x89xf32>
    %c0_54 = arith.constant 0 : index
    %c11 = arith.constant 11 : index
    %105 = vector.load %arg19[%c0_54, %c11] : memref<8x100xf32, #tpu.memory_space<vmem>>, vector<8x89xf32>
    tpu.vector_store %arg19[%c0_54, %c11], %104 {strides = array<i32>} : memref<8x100xf32, #tpu.memory_space<vmem>>, vector<8x89xf32>,
    %c0_55 = arith.constant 0 : index
    %c0_56 = arith.constant 0 : index
    %106 = vector.load %arg19[%c0_55, %c0_56] : memref<8x100xf32, #tpu.memory_space<vmem>>, vector<8x100xf32>
    %c0_57 = arith.constant 0 : index
    %c0_58 = arith.constant 0 : index
    %107 = vector.load %arg18[%c0_57, %c0_58] : memref<72x100xf32, #tpu.memory_space<vmem>>, vector<8x100xf32>
    tpu.vector_store %arg18[%c0_57, %c0_58], %106 {strides = array<i32>} : memref<72x100xf32, #tpu.memory_space<vmem>>, vector<8x100xf32>,
    %108 = vector.extract_strided_slice %106 {offsets = [0, 1], sizes = [8, 99], strides = [1, 1]} : vector<8x100xf32> to vector<8x99xf32>
    %c8_59 = arith.constant 8 : index
    %c0_60 = arith.constant 0 : index
    %109 = vector.load %arg18[%c8_59, %c0_60] : memref<72x100xf32, #tpu.memory_space<vmem>>, vector<8x99xf32>
    tpu.vector_store %arg18[%c8_59, %c0_60], %108 {strides = array<i32>} : memref<72x100xf32, #tpu.memory_space<vmem>>, vector<8x99xf32>,
    %110 = vector.extract_strided_slice %106 {offsets = [0, 2], sizes = [8, 98], strides = [1, 1]} : vector<8x100xf32> to vector<8x98xf32>
    %c16_61 = arith.constant 16 : index
    %c0_62 = arith.constant 0 : index
    %111 = vector.load %arg18[%c16_61, %c0_62] : memref<72x100xf32, #tpu.memory_space<vmem>>, vector<8x98xf32>
    tpu.vector_store %arg18[%c16_61, %c0_62], %110 {strides = array<i32>} : memref<72x100xf32, #tpu.memory_space<vmem>>, vector<8x98xf32>,
    %112 = vector.extract_strided_slice %106 {offsets = [0, 10], sizes = [8, 90], strides = [1, 1]} : vector<8x100xf32> to vector<8x90xf32>
    %c24_63 = arith.constant 24 : index
    %c0_64 = arith.constant 0 : index
    %113 = vector.load %arg18[%c24_63, %c0_64] : memref<72x100xf32, #tpu.memory_space<vmem>>, vector<8x90xf32>
    tpu.vector_store %arg18[%c24_63, %c0_64], %112 {strides = array<i32>} : memref<72x100xf32, #tpu.memory_space<vmem>>, vector<8x90xf32>,
    %114 = vector.extract_strided_slice %106 {offsets = [0, 11], sizes = [8, 89], strides = [1, 1]} : vector<8x100xf32> to vector<8x89xf32>
    %c32_65 = arith.constant 32 : index
    %c0_66 = arith.constant 0 : index
    %115 = vector.load %arg18[%c32_65, %c0_66] : memref<72x100xf32, #tpu.memory_space<vmem>>, vector<8x89xf32>
    tpu.vector_store %arg18[%c32_65, %c0_66], %114 {strides = array<i32>} : memref<72x100xf32, #tpu.memory_space<vmem>>, vector<8x89xf32>,
    %116 = vector.extract_strided_slice %106 {offsets = [0, 12], sizes = [8, 88], strides = [1, 1]} : vector<8x100xf32> to vector<8x88xf32>
    %c40 = arith.constant 40 : index
    %c0_67 = arith.constant 0 : index
    %117 = vector.load %arg18[%c40, %c0_67] : memref<72x100xf32, #tpu.memory_space<vmem>>, vector<8x88xf32>
    tpu.vector_store %arg18[%c40, %c0_67], %116 {strides = array<i32>} : memref<72x100xf32, #tpu.memory_space<vmem>>, vector<8x88xf32>,
    %118 = vector.extract_strided_slice %106 {offsets = [0, 20], sizes = [8, 80], strides = [1, 1]} : vector<8x100xf32> to vector<8x80xf32>
    %c48 = arith.constant 48 : index
    %c0_68 = arith.constant 0 : index
    %119 = vector.load %arg18[%c48, %c0_68] : memref<72x100xf32, #tpu.memory_space<vmem>>, vector<8x80xf32>
    tpu.vector_store %arg18[%c48, %c0_68], %118 {strides = array<i32>} : memref<72x100xf32, #tpu.memory_space<vmem>>, vector<8x80xf32>,
    %120 = vector.extract_strided_slice %106 {offsets = [0, 21], sizes = [8, 79], strides = [1, 1]} : vector<8x100xf32> to vector<8x79xf32>
    %c56 = arith.constant 56 : index
    %c0_69 = arith.constant 0 : index
    %121 = vector.load %arg18[%c56, %c0_69] : memref<72x100xf32, #tpu.memory_space<vmem>>, vector<8x79xf32>
    tpu.vector_store %arg18[%c56, %c0_69], %120 {strides = array<i32>} : memref<72x100xf32, #tpu.memory_space<vmem>>, vector<8x79xf32>,
    %122 = vector.extract_strided_slice %106 {offsets = [0, 22], sizes = [8, 78], strides = [1, 1]} : vector<8x100xf32> to vector<8x78xf32>
    %c64 = arith.constant 64 : index
    %c0_70 = arith.constant 0 : index
    %123 = vector.load %arg18[%c64, %c0_70] : memref<72x100xf32, #tpu.memory_space<vmem>>, vector<8x78xf32>
    tpu.vector_store %arg18[%c64, %c0_70], %122 {strides = array<i32>} : memref<72x100xf32, #tpu.memory_space<vmem>>, vector<8x78xf32>,
    %c0_71 = arith.constant 0 : index
    %c0_72 = arith.constant 0 : index
    %124 = vector.load %arg18[%c0_71, %c0_72] : memref<72x100xf32, #tpu.memory_space<vmem>>, vector<72x100xf32>
    %cst_73 = arith.constant dense<0.000000e+00> : vector<8x100xf32>
    %125 = tpu.matmul %6, %124, %cst_73 {dimension_numbers = #tpu.dot_dimension_numbers<[1], [0], [0], [1], [0, 0, 1, 1], [], []>, precision = #tpu.contract_precision<fp32>} : vector<8x72xf32>, vector<72x100xf32>, vector<8x100xf32> -> vector<8x100xf32>
    %cst_74 = arith.constant dense<0.000000e+00> : vector<8x100xf32>
    %126 = tpu.matmul %7, %74, %cst_74 {dimension_numbers = #tpu.dot_dimension_numbers<[1], [0], [0], [1], [0, 0, 1, 1], [], []>, precision = #tpu.contract_precision<fp32>} : vector<8x4xf32>, vector<4x100xf32>, vector<8x100xf32> -> vector<8x100xf32>
    %127 = arith.addf %125, %126 : vector<8x100xf32>
    %c0_75 = arith.constant 0 : index
    %c0_76 = arith.constant 0 : index
    %128 = vector.load %arg11[%c0_75, %c0_76] : memref<8x72xf32, #tpu.memory_space<vmem>>, vector<8x72xf32>
    %c0_77 = arith.constant 0 : index
    %c0_78 = arith.constant 0 : index
    %129 = vector.load %arg12[%c0_77, %c0_78] : memref<8x72xf32, #tpu.memory_space<vmem>>, vector<8x72xf32>
    %c0_79 = arith.constant 0 : index
    %c0_80 = arith.constant 0 : index
    %130 = vector.load %arg13[%c0_79, %c0_80] : memref<8x1xf32, #tpu.memory_space<vmem>>, vector<8x1xf32>
    %c0_81 = arith.constant 0 : index
    %c0_82 = arith.constant 0 : index
    %131 = vector.load %arg14[%c0_81, %c0_82] : memref<8x1xf32, #tpu.memory_space<vmem>>, vector<8x1xf32>
    %c0_83 = arith.constant 0 : index
    %c0_84 = arith.constant 0 : index
    %132 = vector.load %arg15[%c0_83, %c0_84] : memref<8x1xf32, #tpu.memory_space<vmem>>, vector<8x1xf32>
    %c0_85 = arith.constant 0 : index
    %c0_86 = arith.constant 0 : index
    %133 = vector.load %arg16[%c0_85, %c0_86] : memref<8x1xf32, #tpu.memory_space<vmem>>, vector<8x1xf32>
    %134 = vector.extract_strided_slice %127 {offsets = [0, 0], sizes = [8, 89], strides = [1, 1]} : vector<8x100xf32> to vector<8x89xf32>
    %135 = vector.broadcast %130 : vector<8x1xf32> to vector<8x89xf32>
    %136 = arith.mulf %134, %135 : vector<8x89xf32>
    %137 = vector.broadcast %131 : vector<8x1xf32> to vector<8x89xf32>
    %138 = arith.addf %136, %137 : vector<8x89xf32>
    %cst_87 = arith.constant 0.000000e+00 : f32
    %139 = vector.broadcast %cst_87 : f32 to vector<8x89xf32>
    %140 = arith.maximumf %138, %139 : vector<8x89xf32>
    %141 = vector.extract_strided_slice %4 {offsets = [0, 11], sizes = [1, 89], strides = [1, 1]} : vector<1x100xf32> to vector<1x89xf32>
    %cst_88 = arith.constant 0.000000e+00 : f32
    %142 = vector.broadcast %cst_88 : f32 to vector<1x89xf32>
    %143 = arith.cmpf ogt, %141, %142 : vector<1x89xf32>
    %cst_89 = arith.constant 0.000000e+00 : f32
    %144 = vector.shape_cast %143 : vector<1x89xi1> to vector<1x89xi1>
    %145 = vector.broadcast %144 : vector<1x89xi1> to vector<8x89xi1>
    %146 = vector.broadcast %cst_89 : f32 to vector<8x89xf32>
    %147 = arith.select %145, %140, %146 : vector<8x89xi1>, vector<8x89xf32>
    %c0_90 = arith.constant 0 : index
    %c11_91 = arith.constant 11 : index
    %148 = vector.load %arg19[%c0_90, %c11_91] : memref<8x100xf32, #tpu.memory_space<vmem>>, vector<8x89xf32>
    tpu.vector_store %arg19[%c0_90, %c11_91], %147 {strides = array<i32>} : memref<8x100xf32, #tpu.memory_space<vmem>>, vector<8x89xf32>,
    %c0_92 = arith.constant 0 : index
    %c0_93 = arith.constant 0 : index
    %149 = vector.load %arg19[%c0_92, %c0_93] : memref<8x100xf32, #tpu.memory_space<vmem>>, vector<8x100xf32>
    %c0_94 = arith.constant 0 : index
    %c0_95 = arith.constant 0 : index
    %150 = vector.load %arg18[%c0_94, %c0_95] : memref<72x100xf32, #tpu.memory_space<vmem>>, vector<8x100xf32>
    tpu.vector_store %arg18[%c0_94, %c0_95], %149 {strides = array<i32>} : memref<72x100xf32, #tpu.memory_space<vmem>>, vector<8x100xf32>,
    %151 = vector.extract_strided_slice %149 {offsets = [0, 1], sizes = [8, 99], strides = [1, 1]} : vector<8x100xf32> to vector<8x99xf32>
    %c8_96 = arith.constant 8 : index
    %c0_97 = arith.constant 0 : index
    %152 = vector.load %arg18[%c8_96, %c0_97] : memref<72x100xf32, #tpu.memory_space<vmem>>, vector<8x99xf32>
    tpu.vector_store %arg18[%c8_96, %c0_97], %151 {strides = array<i32>} : memref<72x100xf32, #tpu.memory_space<vmem>>, vector<8x99xf32>,
    %153 = vector.extract_strided_slice %149 {offsets = [0, 2], sizes = [8, 98], strides = [1, 1]} : vector<8x100xf32> to vector<8x98xf32>
    %c16_98 = arith.constant 16 : index
    %c0_99 = arith.constant 0 : index
    %154 = vector.load %arg18[%c16_98, %c0_99] : memref<72x100xf32, #tpu.memory_space<vmem>>, vector<8x98xf32>
    tpu.vector_store %arg18[%c16_98, %c0_99], %153 {strides = array<i32>} : memref<72x100xf32, #tpu.memory_space<vmem>>, vector<8x98xf32>,
    %155 = vector.extract_strided_slice %149 {offsets = [0, 10], sizes = [8, 90], strides = [1, 1]} : vector<8x100xf32> to vector<8x90xf32>
    %c24_100 = arith.constant 24 : index
    %c0_101 = arith.constant 0 : index
    %156 = vector.load %arg18[%c24_100, %c0_101] : memref<72x100xf32, #tpu.memory_space<vmem>>, vector<8x90xf32>
    tpu.vector_store %arg18[%c24_100, %c0_101], %155 {strides = array<i32>} : memref<72x100xf32, #tpu.memory_space<vmem>>, vector<8x90xf32>,
    %157 = vector.extract_strided_slice %149 {offsets = [0, 11], sizes = [8, 89], strides = [1, 1]} : vector<8x100xf32> to vector<8x89xf32>
    %c32_102 = arith.constant 32 : index
    %c0_103 = arith.constant 0 : index
    %158 = vector.load %arg18[%c32_102, %c0_103] : memref<72x100xf32, #tpu.memory_space<vmem>>, vector<8x89xf32>
    tpu.vector_store %arg18[%c32_102, %c0_103], %157 {strides = array<i32>} : memref<72x100xf32, #tpu.memory_space<vmem>>, vector<8x89xf32>,
    %159 = vector.extract_strided_slice %149 {offsets = [0, 12], sizes = [8, 88], strides = [1, 1]} : vector<8x100xf32> to vector<8x88xf32>
    %c40_104 = arith.constant 40 : index
    %c0_105 = arith.constant 0 : index
    %160 = vector.load %arg18[%c40_104, %c0_105] : memref<72x100xf32, #tpu.memory_space<vmem>>, vector<8x88xf32>
    tpu.vector_store %arg18[%c40_104, %c0_105], %159 {strides = array<i32>} : memref<72x100xf32, #tpu.memory_space<vmem>>, vector<8x88xf32>,
    %161 = vector.extract_strided_slice %149 {offsets = [0, 20], sizes = [8, 80], strides = [1, 1]} : vector<8x100xf32> to vector<8x80xf32>
    %c48_106 = arith.constant 48 : index
    %c0_107 = arith.constant 0 : index
    %162 = vector.load %arg18[%c48_106, %c0_107] : memref<72x100xf32, #tpu.memory_space<vmem>>, vector<8x80xf32>
    tpu.vector_store %arg18[%c48_106, %c0_107], %161 {strides = array<i32>} : memref<72x100xf32, #tpu.memory_space<vmem>>, vector<8x80xf32>,
    %163 = vector.extract_strided_slice %149 {offsets = [0, 21], sizes = [8, 79], strides = [1, 1]} : vector<8x100xf32> to vector<8x79xf32>
    %c56_108 = arith.constant 56 : index
    %c0_109 = arith.constant 0 : index
    %164 = vector.load %arg18[%c56_108, %c0_109] : memref<72x100xf32, #tpu.memory_space<vmem>>, vector<8x79xf32>
    tpu.vector_store %arg18[%c56_108, %c0_109], %163 {strides = array<i32>} : memref<72x100xf32, #tpu.memory_space<vmem>>, vector<8x79xf32>,
    %165 = vector.extract_strided_slice %149 {offsets = [0, 22], sizes = [8, 78], strides = [1, 1]} : vector<8x100xf32> to vector<8x78xf32>
    %c64_110 = arith.constant 64 : index
    %c0_111 = arith.constant 0 : index
    %166 = vector.load %arg18[%c64_110, %c0_111] : memref<72x100xf32, #tpu.memory_space<vmem>>, vector<8x78xf32>
    tpu.vector_store %arg18[%c64_110, %c0_111], %165 {strides = array<i32>} : memref<72x100xf32, #tpu.memory_space<vmem>>, vector<8x78xf32>,
    %c0_112 = arith.constant 0 : index
    %c0_113 = arith.constant 0 : index
    %167 = vector.load %arg18[%c0_112, %c0_113] : memref<72x100xf32, #tpu.memory_space<vmem>>, vector<72x100xf32>
    %cst_114 = arith.constant dense<0.000000e+00> : vector<8x100xf32>
    %168 = tpu.matmul %128, %167, %cst_114 {dimension_numbers = #tpu.dot_dimension_numbers<[1], [0], [0], [1], [0, 0, 1, 1], [], []>, precision = #tpu.contract_precision<fp32>} : vector<8x72xf32>, vector<72x100xf32>, vector<8x100xf32> -> vector<8x100xf32>
    %169 = vector.extract_strided_slice %168 {offsets = [0, 0], sizes = [8, 89], strides = [1, 1]} : vector<8x100xf32> to vector<8x89xf32>
    %170 = vector.broadcast %132 : vector<8x1xf32> to vector<8x89xf32>
    %171 = arith.mulf %169, %170 : vector<8x89xf32>
    %172 = vector.broadcast %133 : vector<8x1xf32> to vector<8x89xf32>
    %173 = arith.addf %171, %172 : vector<8x89xf32>
    %cst_115 = arith.constant 0.000000e+00 : f32
    %174 = vector.broadcast %cst_115 : f32 to vector<8x89xf32>
    %175 = arith.maximumf %173, %174 : vector<8x89xf32>
    %176 = vector.extract_strided_slice %4 {offsets = [0, 11], sizes = [1, 89], strides = [1, 1]} : vector<1x100xf32> to vector<1x89xf32>
    %cst_116 = arith.constant 0.000000e+00 : f32
    %177 = vector.broadcast %cst_116 : f32 to vector<1x89xf32>
    %178 = arith.cmpf ogt, %176, %177 : vector<1x89xf32>
    %cst_117 = arith.constant 0.000000e+00 : f32
    %179 = vector.shape_cast %178 : vector<1x89xi1> to vector<1x89xi1>
    %180 = vector.broadcast %179 : vector<1x89xi1> to vector<8x89xi1>
    %181 = vector.broadcast %cst_117 : f32 to vector<8x89xf32>
    %182 = arith.select %180, %175, %181 : vector<8x89xi1>, vector<8x89xf32>
    %c0_118 = arith.constant 0 : index
    %c11_119 = arith.constant 11 : index
    %183 = vector.load %arg19[%c0_118, %c11_119] : memref<8x100xf32, #tpu.memory_space<vmem>>, vector<8x89xf32>
    tpu.vector_store %arg19[%c0_118, %c11_119], %182 {strides = array<i32>} : memref<8x100xf32, #tpu.memory_space<vmem>>, vector<8x89xf32>,
    %c0_120 = arith.constant 0 : index
    %c0_121 = arith.constant 0 : index
    %184 = vector.load %arg19[%c0_120, %c0_121] : memref<8x100xf32, #tpu.memory_space<vmem>>, vector<8x100xf32>
    %c0_122 = arith.constant 0 : index
    %c0_123 = arith.constant 0 : index
    %185 = vector.load %arg18[%c0_122, %c0_123] : memref<72x100xf32, #tpu.memory_space<vmem>>, vector<8x100xf32>
    tpu.vector_store %arg18[%c0_122, %c0_123], %184 {strides = array<i32>} : memref<72x100xf32, #tpu.memory_space<vmem>>, vector<8x100xf32>,
    %186 = vector.extract_strided_slice %184 {offsets = [0, 1], sizes = [8, 99], strides = [1, 1]} : vector<8x100xf32> to vector<8x99xf32>
    %c8_124 = arith.constant 8 : index
    %c0_125 = arith.constant 0 : index
    %187 = vector.load %arg18[%c8_124, %c0_125] : memref<72x100xf32, #tpu.memory_space<vmem>>, vector<8x99xf32>
    tpu.vector_store %arg18[%c8_124, %c0_125], %186 {strides = array<i32>} : memref<72x100xf32, #tpu.memory_space<vmem>>, vector<8x99xf32>,
    %188 = vector.extract_strided_slice %184 {offsets = [0, 2], sizes = [8, 98], strides = [1, 1]} : vector<8x100xf32> to vector<8x98xf32>
    %c16_126 = arith.constant 16 : index
    %c0_127 = arith.constant 0 : index
    %189 = vector.load %arg18[%c16_126, %c0_127] : memref<72x100xf32, #tpu.memory_space<vmem>>, vector<8x98xf32>
    tpu.vector_store %arg18[%c16_126, %c0_127], %188 {strides = array<i32>} : memref<72x100xf32, #tpu.memory_space<vmem>>, vector<8x98xf32>,
    %190 = vector.extract_strided_slice %184 {offsets = [0, 10], sizes = [8, 90], strides = [1, 1]} : vector<8x100xf32> to vector<8x90xf32>
    %c24_128 = arith.constant 24 : index
    %c0_129 = arith.constant 0 : index
    %191 = vector.load %arg18[%c24_128, %c0_129] : memref<72x100xf32, #tpu.memory_space<vmem>>, vector<8x90xf32>
    tpu.vector_store %arg18[%c24_128, %c0_129], %190 {strides = array<i32>} : memref<72x100xf32, #tpu.memory_space<vmem>>, vector<8x90xf32>,
    %192 = vector.extract_strided_slice %184 {offsets = [0, 11], sizes = [8, 89], strides = [1, 1]} : vector<8x100xf32> to vector<8x89xf32>
    %c32_130 = arith.constant 32 : index
    %c0_131 = arith.constant 0 : index
    %193 = vector.load %arg18[%c32_130, %c0_131] : memref<72x100xf32, #tpu.memory_space<vmem>>, vector<8x89xf32>
    tpu.vector_store %arg18[%c32_130, %c0_131], %192 {strides = array<i32>} : memref<72x100xf32, #tpu.memory_space<vmem>>, vector<8x89xf32>,
    %194 = vector.extract_strided_slice %184 {offsets = [0, 12], sizes = [8, 88], strides = [1, 1]} : vector<8x100xf32> to vector<8x88xf32>
    %c40_132 = arith.constant 40 : index
    %c0_133 = arith.constant 0 : index
    %195 = vector.load %arg18[%c40_132, %c0_133] : memref<72x100xf32, #tpu.memory_space<vmem>>, vector<8x88xf32>
    tpu.vector_store %arg18[%c40_132, %c0_133], %194 {strides = array<i32>} : memref<72x100xf32, #tpu.memory_space<vmem>>, vector<8x88xf32>,
    %196 = vector.extract_strided_slice %184 {offsets = [0, 20], sizes = [8, 80], strides = [1, 1]} : vector<8x100xf32> to vector<8x80xf32>
    %c48_134 = arith.constant 48 : index
    %c0_135 = arith.constant 0 : index
    %197 = vector.load %arg18[%c48_134, %c0_135] : memref<72x100xf32, #tpu.memory_space<vmem>>, vector<8x80xf32>
    tpu.vector_store %arg18[%c48_134, %c0_135], %196 {strides = array<i32>} : memref<72x100xf32, #tpu.memory_space<vmem>>, vector<8x80xf32>,
    %198 = vector.extract_strided_slice %184 {offsets = [0, 21], sizes = [8, 79], strides = [1, 1]} : vector<8x100xf32> to vector<8x79xf32>
    %c56_136 = arith.constant 56 : index
    %c0_137 = arith.constant 0 : index
    %199 = vector.load %arg18[%c56_136, %c0_137] : memref<72x100xf32, #tpu.memory_space<vmem>>, vector<8x79xf32>
    tpu.vector_store %arg18[%c56_136, %c0_137], %198 {strides = array<i32>} : memref<72x100xf32, #tpu.memory_space<vmem>>, vector<8x79xf32>,
    %200 = vector.extract_strided_slice %184 {offsets = [0, 22], sizes = [8, 78], strides = [1, 1]} : vector<8x100xf32> to vector<8x78xf32>
    %c64_138 = arith.constant 64 : index
    %c0_139 = arith.constant 0 : index
    %201 = vector.load %arg18[%c64_138, %c0_139] : memref<72x100xf32, #tpu.memory_space<vmem>>, vector<8x78xf32>
    tpu.vector_store %arg18[%c64_138, %c0_139], %200 {strides = array<i32>} : memref<72x100xf32, #tpu.memory_space<vmem>>, vector<8x78xf32>,
    %c0_140 = arith.constant 0 : index
    %c0_141 = arith.constant 0 : index
    %202 = vector.load %arg18[%c0_140, %c0_141] : memref<72x100xf32, #tpu.memory_space<vmem>>, vector<72x100xf32>
    %cst_142 = arith.constant dense<0.000000e+00> : vector<8x100xf32>
    %203 = tpu.matmul %129, %202, %cst_142 {dimension_numbers = #tpu.dot_dimension_numbers<[1], [0], [0], [1], [0, 0, 1, 1], [], []>, precision = #tpu.contract_precision<fp32>} : vector<8x72xf32>, vector<72x100xf32>, vector<8x100xf32> -> vector<8x100xf32>
    %204 = arith.addf %127, %203 : vector<8x100xf32>
    %c0_143 = arith.constant 0 : index
    %c0_144 = arith.constant 0 : index
    %c0_145 = arith.constant 0 : index
    %205 = vector.load %arg17[%c0_143, %c0_144, %c0_145] : memref<1x8x100xf32, #tpu.memory_space<vmem>>, vector<1x8x100xf32>
    %206 = vector.shape_cast %205 : vector<1x8x100xf32> to vector<8x100xf32>
    %207 = vector.shape_cast %204 : vector<8x100xf32> to vector<1x8x100xf32>
    tpu.vector_store %arg17[%c0_143, %c0_144, %c0_145], %207 {strides = array<i32>} : memref<1x8x100xf32, #tpu.memory_space<vmem>>, vector<1x8x100xf32>,
    return
  }
  func.func @transform_0(%arg0: i32) -> (i32, i32, i32, i32) {
    %c0_i32 = arith.constant 0 : i32
    %c0_i32_0 = arith.constant 0 : i32
    %c0_i32_1 = arith.constant 0 : i32
    %c0_i32_2 = arith.constant 0 : i32
    return %arg0, %c0_i32, %c0_i32_0, %c0_i32_1 : i32, i32, i32, i32
  }
  func.func @transform_1(%arg0: i32) -> (i32, i32) {
    %c0_i32 = arith.constant 0 : i32
    %c0_i32_0 = arith.constant 0 : i32
    %c0_i32_1 = arith.constant 0 : i32
    return %c0_i32, %c0_i32_0 : i32, i32
  }
  func.func @transform_2(%arg0: i32) -> (i32, i32) {
    %c0_i32 = arith.constant 0 : i32
    %c0_i32_0 = arith.constant 0 : i32
    %c0_i32_1 = arith.constant 0 : i32
    return %c0_i32, %c0_i32_0 : i32, i32
  }
  func.func @transform_3(%arg0: i32) -> (i32, i32) {
    %c0_i32 = arith.constant 0 : i32
    %c0_i32_0 = arith.constant 0 : i32
    %c0_i32_1 = arith.constant 0 : i32
    return %c0_i32, %c0_i32_0 : i32, i32
  }
  func.func @transform_4(%arg0: i32) -> (i32, i32) {
    %c0_i32 = arith.constant 0 : i32
    %c0_i32_0 = arith.constant 0 : i32
    %c0_i32_1 = arith.constant 0 : i32
    return %c0_i32, %c0_i32_0 : i32, i32
  }
  func.func @transform_5(%arg0: i32) -> (i32, i32) {
    %c0_i32 = arith.constant 0 : i32
    %c0_i32_0 = arith.constant 0 : i32
    %c0_i32_1 = arith.constant 0 : i32
    return %c0_i32, %c0_i32_0 : i32, i32
  }
  func.func @transform_6(%arg0: i32) -> (i32, i32) {
    %c0_i32 = arith.constant 0 : i32
    %c0_i32_0 = arith.constant 0 : i32
    %c0_i32_1 = arith.constant 0 : i32
    return %c0_i32, %c0_i32_0 : i32, i32
  }
  func.func @transform_7(%arg0: i32) -> (i32, i32) {
    %c0_i32 = arith.constant 0 : i32
    %c0_i32_0 = arith.constant 0 : i32
    %c0_i32_1 = arith.constant 0 : i32
    return %c0_i32, %c0_i32_0 : i32, i32
  }
  func.func @transform_8(%arg0: i32) -> (i32, i32) {
    %c0_i32 = arith.constant 0 : i32
    %c0_i32_0 = arith.constant 0 : i32
    %c0_i32_1 = arith.constant 0 : i32
    return %c0_i32, %c0_i32_0 : i32, i32
  }
  func.func @transform_9(%arg0: i32) -> (i32, i32) {
    %c0_i32 = arith.constant 0 : i32
    %c0_i32_0 = arith.constant 0 : i32
    %c0_i32_1 = arith.constant 0 : i32
    return %c0_i32, %c0_i32_0 : i32, i32
  }
  func.func @transform_10(%arg0: i32) -> (i32, i32) {
    %c0_i32 = arith.constant 0 : i32
    %c0_i32_0 = arith.constant 0 : i32
    %c0_i32_1 = arith.constant 0 : i32
    return %c0_i32, %c0_i32_0 : i32, i32
  }
  func.func @transform_11(%arg0: i32) -> (i32, i32) {
    %c0_i32 = arith.constant 0 : i32
    %c0_i32_0 = arith.constant 0 : i32
    %c0_i32_1 = arith.constant 0 : i32
    return %c0_i32, %c0_i32_0 : i32, i32
  }
  func.func @transform_12(%arg0: i32) -> (i32, i32) {
    %c0_i32 = arith.constant 0 : i32
    %c0_i32_0 = arith.constant 0 : i32
    %c0_i32_1 = arith.constant 0 : i32
    return %c0_i32, %c0_i32_0 : i32, i32
  }
  func.func @transform_13(%arg0: i32) -> (i32, i32) {
    %c0_i32 = arith.constant 0 : i32
    %c0_i32_0 = arith.constant 0 : i32
    %c0_i32_1 = arith.constant 0 : i32
    return %c0_i32, %c0_i32_0 : i32, i32
  }
  func.func @transform_14(%arg0: i32) -> (i32, i32) {
    %c0_i32 = arith.constant 0 : i32
    %c0_i32_0 = arith.constant 0 : i32
    %c0_i32_1 = arith.constant 0 : i32
    return %c0_i32, %c0_i32_0 : i32, i32
  }
  func.func @transform_15(%arg0: i32) -> (i32, i32) {
    %c0_i32 = arith.constant 0 : i32
    %c0_i32_0 = arith.constant 0 : i32
    %c0_i32_1 = arith.constant 0 : i32
    return %c0_i32, %c0_i32_0 : i32, i32
  }
  func.func @transform_16(%arg0: i32) -> (i32, i32, i32) {
    %c0_i32 = arith.constant 0 : i32
    %c0_i32_0 = arith.constant 0 : i32
    %c0_i32_1 = arith.constant 0 : i32
    return %arg0, %c0_i32, %c0_i32_0 : i32, i32, i32
  }
}

</mosaic_0001>

<bundles_post_ra>
// kernel: forward.1
= control target key start
LH: loop header
LB: loop body
LE: loop exit
PB: predicated region body
PF: predicated region fallthrough
CT: control target
= control target key end

     0   :  { %s2135_s21 = smov 0   ;;  %s2599_s0 = inlined_call_operand.vmem [shape: f32[2,4,4,100], index: 0, kind: input, shape index: {}]   ;;  %s2600_s1 = inlined_call_operand.vmem [shape: f32[4,100], index: 1, kind: input, shape index: {}]   ;;  %s2601_s2 = inlined_call_operand.vmem [shape: f32[1,100], index: 2, kind: input, shape index: {}]   ;;  %s2602_s3 = inlined_call_operand.vmem [shape: f32[8,36], index: 3, kind: input, shape index: {}]   ;;  %s2603_s4 = inlined_call_operand.vmem [shape: f32[8,72], index: 4, kind: input, shape index: {}]   ;;  %s2604_s5 = inlined_call_operand.vmem [shape: f32[8,4], index: 5, kind: input, shape index: {}]   ;;  %s2605_s6 = inlined_call_operand.vmem [shape: f32[4,1], index: 6, kind: input, shape index: {}]   ;;  %s2606_s7 = inlined_call_operand.vmem [shape: f32[4,1], index: 7, kind: input, shape index: {}]   ;;  %s2607_s8 = inlined_call_operand.vmem [shape: f32[8,1], index: 8, kind: input, shape index: {}]   ;;  %s2608_s9 = inlined_call_operand.vmem [shape: f32[8,1], index: 9, kind: input, shape index: {}]   ;;  %s2609_s10 = inlined_call_operand.vmem [shape: f32[8,72], index: 10, kind: input, shape index: {}]   ;;  %s2610_s11 = inlined_call_operand.vmem [shape: f32[8,72], index: 11, kind: input, shape index: {}]   ;;  %s2611_s12 = inlined_call_operand.vmem [shape: f32[8,1], index: 12, kind: input, shape index: {}]   ;;  %s2612_s13 = inlined_call_operand.vmem [shape: f32[8,1], index: 13, kind: input, shape index: {}]   ;;  %s2613_s14 = inlined_call_operand.vmem [shape: f32[8,1], index: 14, kind: input, shape index: {}]   ;;  %s2614_s15 = inlined_call_operand.vmem [shape: f32[8,1], index: 15, kind: input, shape index: {}]   ;;  %s2615_s16 = inlined_call_operand.vmem [shape: f32[2,8,100], index: 16, kind: output, shape index: {}]  }
   0x1   :  { %2620 = sst [smem:[#allocation4_spill]] %s2599_s0 }
   0x2 LB: > { %s1998_s22 = sadd.s32 4294967295, %s2037_s21   ;;  %p2002_p0 = scmp.ge.s32.totalorder %s2037_s21, 1  ;;  %s2037_s21 = sphi %s2135_s21, %s26_s21  }
   0x3   : > { %p462_p1 = scmp.lt.s32.totalorder %s2037_s21, 3 }
   0x5   : > { %p463_p2 = pnand %p2002_p0, %p462_p1 }
   0x6   : > { %p511_p3 = scmp.lt.s32.totalorder (!%p463_p2), %s1998_s22, 1  ;;  %s2621_s17 = sld [smem:[#allocation4_spill]] (!%p463_p2) }
   0x7   : > { %466 = sbr.rel (%p463_p2) target bundleno = 1711 (0x6af), region = 84  ;;  %s2616_s19 = smov (!%p463_p2), 118  }
   0x8   : > { %s2042_s20 = smov (!%p463_p2), 127   ;;  %s2618_s23 = smov (!%p463_p2), 117  }
   0x9   : > { %s2044_s30 = smov (!%p463_p2), 11   ;;  %s2046_s24 = smov (!%p463_p2), 107  }
   0xa   : > { %s2047_s25 = smov (!%p463_p2), 106   ;;  %s2048_s26 = smov (!%p463_p2), 116  }
   0xb   : > { %s2624_s27 = smov (!%p463_p2), 118   ;;  %s2625_s28 = smov (!%p463_p2), 117  }
   0xc   : > { %v535_v0 = vld [vmem:[%s2605_s6] sm:$0xf]  ;;  %v2039_v1 = vmov 0   ;;  %vm520_vm0 = vcmask 818176   ;;  %v2040_v3 = vmov 0.0   ;;  %s2627_s22 = smov (!%p511_p3, %s1998_s22), 1 }
   0xd   : > { %2028 = vset.pattern.permute.xlu0 %v2039_v1  ;;  %2029 = vset.pattern.permute.xlu1 %v2039_v1  ;;  %v536_v2 = vld [vmem:[%s2606_s7] sm:$0xf]  ;;  %521 = vst.msk [vmem:[#allocation2] sm:$0xff] %vm520_vm0, %v2040_v3  ;;  %s2008_s29 = sshll.u32 %s2627_s22, 4  ;;  %vm580_vm3 = vcmask 814080   ;;  %vm599_vm7 = vcmask 732160  }
   0xe   : > { %547 = vperm.xlu0 %2028, %v535_v0   ;;  %2030 = vset.pattern.permute.xlu2 %v2039_v1  ;;  %522 = vst.msk [vmem:[#allocation2 + $0x8] sm:$0xff] %vm520_vm0, %v2040_v3  ;;  %v543_v4 = vld [vmem:[%s2600_s1] sm:$0xf]  ;;  %s515_s18 = scalar_lea.vmem %s2621_s17, %s2008_s29  ;;  %vm587_vm8 = vcmask 805888   ;;  %vm609_vm9 = vcmask 723968   ;;  %vm616_vm10 = vcmask 293888  }
   0xf   : > { %523 = vst.msk [vmem:[#allocation2 + $0x10] sm:$0xff] %vm520_vm0, %v2040_v3  ;;  %vm544_vm1 = vcmp.gt.f32.partialorder %v543_v4, 0.0  ;;  %v539_v7 = vld [vmem:[%s515_s18] sm:$0xf]  ;;  %v541_v8 = vld [vmem:[%s515_s18 + $0x8] sm:$0xf] }
  0x10   : > { %524 = vst.msk [vmem:[#allocation2 + $0x18] sm:$0xff] %vm520_vm0, %v2040_v3  ;;  %v558_v6 = vsel %vm544_vm1, 1, %v2039_v1  ;;  %v542_v9 = vld [vmem:[%s515_s18 + $0xc] sm:$0xf]  ;;  %v540_v10 = vld [vmem:[%s515_s18 + $0x4] sm:$0xf] }
  0x11   : > { %525 = vst.msk [vmem:[#allocation2 + $0x20] sm:$0xff] %vm520_vm0, %v2040_v3  ;;  %v565_v11 = vperm.slane %v558_v6, 1  ;;  %v559_v12 = vperm.slane %v558_v6, 0  ;;  %v571_v13 = vperm.slane %v558_v6, 2  ;;  %v577_v14 = vperm.slane %v558_v6, 3  ;;  %v532_v36 = vld [vmem:[%s2602_s3] sm:$0xff] }
  0x12   : > { %526 = vst.msk [vmem:[#allocation2 + $0x28] sm:$0xff] %vm520_vm0, %v2040_v3  ;;  %v618_v37 = vsel %vm616_vm10, %v532_v36, 0  ;;  %vm620_vm11 = vcmask 1043456   ;;  %v537_v51 = vld [vmem:[%s2607_s8] sm:$0xff]  ;;  %vm844_vm14 = vcmask 818264   ;;  %s2045_s18 = smov 108  }
  0x13   : > { %527 = vst.msk [vmem:[#allocation2 + $0x30] sm:$0xff] %vm520_vm0, %v2040_v3  ;;  %vm566_vm2 = vcmp.eq.s32.totalorder %v565_v11, 1  ;;  %vm560_vm4 = vcmp.eq.s32.totalorder %v559_v12, 1  ;;  %vm572_vm5 = vcmp.eq.s32.totalorder %v571_v13, 1  ;;  %vm578_vm6 = vcmp.eq.s32.totalorder %v577_v14, 1  ;;  %v538_v52 = vld [vmem:[%s2608_s9] sm:$0xff] }
  0x14   : > { %528 = vst.msk [vmem:[#allocation2 + $0x38] sm:$0xff] %vm520_vm0, %v2040_v3  ;;  %v2185_v40 = vand.u32 4294901760, %v618_v37  ;;  %v531_v36 = vld [vmem:[%s2601_s2] sm:$0x1]  ;;  %s2049_s29 = smov 126   ;;  %vm898_vm15 = vcmask 31744  }
  0x15   : > { %529 = vst.msk [vmem:[#allocation2 + $0x40] sm:$0xff] %vm520_vm0, %v2040_v3  ;;  %vm835_vm12 = vcmp.gt.f32.partialorder %v531_v36, 0.0  ;;  %vm882_vm1 = vcmask 646144  }
  0x16   : > { %553 = vperm.xlu0 %2028, %v536_v2   ;;  %530 = vst.msk [vmem:[#allocation3] sm:$0xff] %vm520_vm0, %v2040_v3  ;;  %v646_v47 = vsub.f32 %v618_v37, %v2185_v40  ;;  %v836_v37 = vsel %vm835_vm12, 1, %v2039_v1  ;;  %v1307_v1 = vld [vmem:[%s2611_s12] sm:$0xff] }
  0x18   : > { %v647_v57 = vand.u32 4294901760, %v646_v47 }
  0x1a   : > { %v648_v0 = vsub.f32 %v646_v47, %v647_v57 }
  0x80   : > { %v548_v5 = vpop.permute.xlu0 %547 }
  0x81   : > { %v550_v15 = vmul.f32 %v548_v5, %v539_v7  ;;  %v568_v16 = vmul.f32 %v548_v5, %v541_v8  ;;  %v574_v17 = vmul.f32 %v548_v5, %v542_v9  ;;  %v562_v18 = vmul.f32 %v548_v5, %v540_v10 }
  0x82   : > { %v649_v7 = vand.u32 4294901760, %v648_v0 }
  0x88   : > { %v554_v19 = vpop.permute.xlu0 %553 }
  0x89   : > { %v556_v20 = vadd.f32 %v554_v19, %v550_v15  ;;  %v575_v21 = vadd.f32 %v574_v17, %v554_v19  ;;  %v563_v22 = vadd.f32 %v562_v18, %v554_v19  ;;  %v569_v23 = vadd.f32 %v568_v16, %v554_v19 }
  0x8b   : > { %v576_v24 = vmax.f32 %v575_v21, 0.0  ;;  %v564_v25 = vmax.f32 %v563_v22, 0.0  ;;  %v557_v26 = vmax.f32 %v556_v20, 0.0  ;;  %v570_v27 = vmax.f32 %v569_v23, 0.0 }
  0x8d   : > { %v567_v28 = vsel %vm566_vm2, %v564_v25, 0.0  ;;  %v561_v29 = vsel %vm560_vm4, %v557_v26, 0.0  ;;  %v573_v30 = vsel %vm572_vm5, %v570_v27, 0.0  ;;  %v579_v31 = vsel %vm578_vm6, %v576_v24, 0.0 }
  0x8e   : > { %602 = vrot.lane.b32.xlu2 %v567_v28, %s2616_s19  ;;  %582 = vst.msk [vmem:[#allocation2 + $0x4] sm:$0xf] %vm580_vm3, %v567_v28  ;;  %584 = vrot.lane.b32.xlu0 %v561_v29, %s2042_s20  ;;  %v903_v62 = vsel %vm620_vm11, %v579_v31, 0  ;;  %vm867_vm2 = vcmask 728064   ;;  %vm877_vm4 = vcmask 654336   ;;  %vm887_vm5 = vcmask 637952  }
  0x8f   : > { %581 = vst.msk [vmem:[#allocation2] sm:$0xf] %vm580_vm3, %v561_v29  ;;  %606 = vrot.lane.b32.xlu1 %v561_v29, %s2618_s23  ;;  %v920_v5 = vand.u32 4294901760, %v903_v62  ;;  %vm862_vm6 = vcmask 736256  }
  0x90   : > { %589 = vst.msk [vmem:[#allocation2 + $0xc] sm:$0xf] %vm580_vm3, %v573_v30 }
  0x91   : > { %590 = vst.msk [vmem:[#allocation2 + $0x10] sm:$0xf] %vm580_vm3, %v579_v31  ;;  %v947_v12 = vsub.f32 %v903_v62, %v920_v5  ;;  %vm852_vm3 = vcmask 809984  }
  0x93   : > { %v948_v17 = vand.u32 4294901760, %v947_v12 }
  0x95   : > { %v949_v18 = vsub.f32 %v947_v12, %v948_v17 }
  0x96   : > { %592 = vrot.lane.b32.xlu2 %v573_v30, %s2042_s20  ;;  %v611_v48 = vld [vmem:[#allocation2] sm:$0xff] }
  0x97   : > { %596 = vrot.lane.b32.xlu1 %v561_v29, %s2616_s19  ;;  %v643_v56 = vand.u32 4294901760, %v611_v48  ;;  %v950_v19 = vand.u32 4294901760, %v949_v18 }
  0x99   : > { %v690_v63 = vsub.f32 %v611_v48, %v643_v56 }
  0x9b   : > { %v691_v9 = vand.u32 4294901760, %v690_v63 }
  0x9d   : > { %v692_v14 = vsub.f32 %v690_v63, %v691_v9 }
  0x9e   : > { %830 = vperm.xlu2 %2030, %v538_v52  }
  0x9f   : > { %824 = vperm.xlu1 %2029, %v537_v51   ;;  %v693_v16 = vand.u32 4294901760, %v692_v14 }
  0xe8   : > { %v603_v32 = vpop.permute.xlu2 %602 }
  0xe9   : > { %605 = vst.msk [vmem:[#allocation2 + $0x1c] sm:$0xf] %vm599_vm7, %v603_v32 }
  0xf0   : > { %v593_v33 = vpop.permute.xlu2 %592 }
  0xf1   : > { %595 = vst.msk [vmem:[#allocation2 + $0x14] sm:$0xf] %vm587_vm8, %v593_v33 }
  0xf8   : > { %v613_v42 = vld [vmem:[#allocation2 + $0x10] sm:$0xff]  ;;  %v831_v32 = vpop.permute.xlu2 %830 }
  0xf9   : > { %v2194_v46 = vand.u32 4294901760, %v613_v42 }
  0xfb   : > { %v678_v55 = vsub.f32 %v613_v42, %v2194_v46 }
  0xfd   : > { %v679_v2 = vand.u32 4294901760, %v678_v55 }
  0xff   : > { %v680_v8 = vsub.f32 %v678_v55, %v679_v2 }
 0x100   : > { %v585_v34 = vpop.permute.xlu0 %584 }
 0x101   : > { %588 = vst.msk [vmem:[#allocation2 + $0x8] sm:$0xf] %vm587_vm8, %v585_v34  ;;  %v607_v35 = vpop.permute.xlu1 %606  ;;  %v681_v13 = vand.u32 4294901760, %v680_v8  ;;  %vm1051_vm8 = vcmask 588800  }
 0x102   : > { %610 = vst.msk [vmem:[#allocation2 + $0x20] sm:$0xf] %vm609_vm9, %v607_v35  ;;  %vm857_vm9 = vcmask 801792  }
 0x108   : > { %v612_v44 = vld [vmem:[#allocation2 + $0x8] sm:$0xff] }
 0x109   : > { %v597_v38 = vpop.permute.xlu1 %596  ;;  %v615_v39 = vld [vmem:[#allocation2 + $0x20] sm:$0xf]  ;;  %v2197_v50 = vand.u32 4294901760, %v612_v44 }
 0x10a   : > { %600 = vst.msk [vmem:[#allocation2 + $0x18] sm:$0xf] %vm599_vm7, %v597_v38  ;;  %v622_v41 = vsel %vm620_vm11, %v615_v39, 0  ;;  %v837_v38 = vperm.slane %v836_v37, 0  ;;  %vm872_vm7 = vcmask 719872  }
 0x10b   : > { %v2189_v43 = vand.u32 4294901760, %v622_v41  ;;  %v684_v60 = vsub.f32 %v612_v44, %v2197_v50  ;;  %v534_v44 = vld [vmem:[%s2604_s5] sm:$0xff] }
 0x10c   : > { %vm2223_vm13 = vcmp.eq.s32.totalorder %v837_v38, 1 }
 0x10d   : > { %636 = vmatpush.msra.mxu0 %v2189_v43  ;;  %744 = vmatpush.msra.mxu3 %v2189_v43  ;;  %v666_v45 = vsub.f32 %v622_v41, %v2189_v43  ;;  %v685_v4 = vand.u32 4294901760, %v684_v60 }
 0x10f   : > { %713 = vmatpush.msra.mxu2 %v666_v45  ;;  %v667_v49 = vand.u32 4294901760, %v666_v45  ;;  %v686_v11 = vsub.f32 %v684_v60, %v685_v4 }
 0x111   : > { %v614_v53 = vld [vmem:[#allocation2 + $0x18] sm:$0xff]  ;;  %v668_v54 = vsub.f32 %v666_v45, %v667_v49  ;;  %v687_v15 = vand.u32 4294901760, %v686_v11  ;;  %v825_v30 = vpop.permute.xlu1 %824  ;;  %v900_v45 = vsel %vm898_vm15, %v534_v44, 0 }
 0x112   : > { %v637_v58 = vand.u32 4294901760, %v614_v53 }
 0x113   : > { %v669_v59 = vand.u32 4294901760, %v668_v54 }
 0x114   : > { %638 = vmatpush.msra.mxu0 %v637_v58  ;;  %746 = vmatpush.msra.mxu3 %v637_v58  ;;  %v672_v61 = vsub.f32 %v614_v53, %v637_v58 }
 0x115   : > { %670 = vmatpush.msra.mxu1 %v669_v59 }
 0x116   : > { %640 = vmatpush.msra.mxu0 %v2194_v46  ;;  %716 = vmatpush.msra.mxu2 %v672_v61  ;;  %v673_v3 = vand.u32 4294901760, %v672_v61 }
 0x117   : > { %748 = vmatpush.msra.mxu3 %v2194_v46 }
 0x118   : > { %642 = vmatpush.msra.mxu0 %v2197_v50  ;;  %719 = vmatpush.msra.mxu2 %v678_v55  ;;  %v674_v6 = vsub.f32 %v672_v61, %v673_v3 }
 0x119   : > { %750 = vmatpush.msra.mxu3 %v2197_v50 }
 0x11a   : > { %644 = vmatpush.msra.mxu0 %v643_v56  ;;  %722 = vmatpush.msra.mxu2 %v684_v60  ;;  %v675_v10 = vand.u32 4294901760, %v674_v6 }
 0x11b   : > { %752 = vmatpush.msra.mxu3 %v643_v56  ;;  %650 = vmatmul.f32.vlgmr.msra.gmra.mxu0 %v649_v7 }
 0x11c   : > { %774 = vmatpush.msrb.mxu0 %v667_v49  ;;  %676 = vmatpush.msra.mxu1 %v675_v10 }
 0x11d   : > { %997 = vmatpush.msrb.mxu3 %v920_v5  ;;  %725 = vmatpush.msra.mxu2 %v690_v63 }
 0x11e   : > { %778 = vmatpush.msrb.mxu0 %v673_v3  ;;  %682 = vmatpush.msra.mxu1 %v681_v13 }
 0x11f   : > { %974 = vmatpush.msrb.mxu2 %v947_v12  ;;  %756 = vmatmul.f32.vlgmr.msra.gmra.mxu3 %v647_v57 }
 0x120   : > { %728 = vmatmul.f32.vlgmr.msra.gmra.mxu2 %v646_v47  ;;  %782 = vmatpush.msrb.mxu0 %v679_v2  ;;  %v533_v2 = vld [vmem:[%s2603_s4] sm:$0xff] }
 0x121   : > { %688 = vmatpush.msra.mxu1 %v687_v15  ;;  %v1053_v8 = vsel %vm1051_vm8, %v533_v2, 0 }
 0x122   : > { %786 = vmatpush.msrb.mxu0 %v685_v4  ;;  %v2284_v11 = vand.u32 4294901760, %v1053_v8 }
 0x123   : > { %694 = vmatpush.msra.mxu1 %v693_v16 }
 0x124   : > { %696 = vmatmul.f32.vlgmr.msra.gmra.mxu1 %v2185_v40  ;;  %790 = vmatpush.msrb.mxu0 %v691_v9 }
 0x125   : > { %808 = vmatpush.msrb.mxu1 %v2189_v43  ;;  %792 = vmatmul.f32.vlgmr.msrb.gmra.mxu0 %v2185_v40  ;;  %v1308_v43 = vld [vmem:[%s2612_s13] sm:$0xff] }
 0x126   : > { %921 = vmatpush.msra.mxu0 %v920_v5 }
 0x127   : > { %810 = vmatpush.msrb.mxu1 %v637_v58 }
 0x128   : > { %1023 = vmatpush.msrb.mxu0 %v948_v17 }
 0x129   : > { %812 = vmatpush.msrb.mxu1 %v2194_v46  ;;  %v922_v46 = vand.u32 4294901760, %v900_v45 }
 0x12b   : > { %814 = vmatpush.msrb.mxu1 %v2197_v50  ;;  %v923_v47 = vsub.f32 %v900_v45, %v922_v46 }
 0x12d   : > { %816 = vmatpush.msrb.mxu1 %v643_v56  ;;  %v924_v49 = vand.u32 4294901760, %v923_v47  ;;  %977 = vmatmul.f32.vlgmr.msrb.gmra.mxu2 %v923_v47 }
 0x12e   : > { %818 = vmatmul.f32.vlgmr.msrb.gmra.mxu1 %v2185_v40 }
 0x12f   : > { %951 = vmatpush.msra.mxu1 %v950_v19  ;;  %v925_v50 = vsub.f32 %v923_v47, %v924_v49  ;;  %1001 = vmatmul.f32.vlgmr.msrb.gmra.mxu3 %v924_v49 }
 0x131   : > { %1045 = vmatpush.msrb.mxu1 %v920_v5  ;;  %v926_v51 = vand.u32 4294901760, %v925_v50 }
 0x133   : > { %927 = vmatmul.f32.vlgmr.msra.gmra.mxu0 %v926_v51 }
 0x136   : > { %953 = vmatmul.f32.vlgmr.msra.gmra.mxu1 %v922_v46 }
 0x13b   : > { %1025 = vmatmul.f32.vlgmr.msrb.gmra.mxu0 %v922_v46 }
 0x13e   : > { %1047 = vmatmul.f32.vlgmr.msrb.gmra.mxu1 %v922_v46 }
 0x198   : > { %v651_v20 = vpop.f32.mrf.mxu0 }
 0x1a1   : > { %v697_v21 = vpop.f32.mrf.mxu1 }
 0x1a2   : > { %v698_v22 = vadd.f32 %v697_v21, %v651_v20  ;;  %v757_v24 = vpop.f32.mrf.mxu3  ;;  %v793_v26 = vpop.f32.mrf.mxu0 }
 0x1a3   : > { %v729_v23 = vpop.f32.mrf.mxu2 }
 0x1a4   : > { %v730_v25 = vadd.f32 %v729_v23, %v698_v22 }
 0x1a6   : > { %v758_v27 = vadd.f32 %v757_v24, %v730_v25  ;;  %v1081_v25 = vsub.f32 %v1053_v8, %v2284_v11 }
 0x1a8   : > { %v794_v28 = vadd.f32 %v793_v26, %v758_v27 }
 0x1ab   : > { %v819_v29 = vpop.f32.mrf.mxu1 }
 0x1ac   : > { %v820_v31 = vadd.f32 %v819_v29, %v794_v28 }
 0x1ae   : > { %v827_v33 = vmul.f32 %v825_v30, %v820_v31 }
 0x1b0   : > { %v833_v34 = vadd.f32 %v831_v32, %v827_v33 }
 0x1b2   : > { %v834_v35 = vmax.f32 %v833_v34, 0.0  ;;  %v1082_v34 = vand.u32 4294901760, %v1081_v25 }
 0x1b4   : > { %840 = vrot.lane.b32.xlu0 %v834_v35, %s2044_s30 }
 0x226   : > { %v841_v40 = vpop.permute.xlu0 %840 }
 0x227   : > { %v843_v41 = vsel %vm2223_vm13, %v841_v40, 0.0 }
 0x228   : > { %845 = vst.msk [vmem:[#allocation3] sm:$0xff] %vm844_vm14, %v843_v41 }
 0x22f   : > { %v846_v42 = vld [vmem:[#allocation3] sm:$0xff] }
 0x230   : > { %874 = vrot.lane.b32.xlu0 %v846_v42, %s2045_s18  ;;  %847 = vst.msk [vmem:[#allocation2] sm:$0xff] %vm520_vm0, %v846_v42  ;;  %879 = vrot.lane.b32.xlu2 %v846_v42, %s2046_s24 }
 0x231   : > { %884 = vrot.lane.b32.xlu1 %v846_v42, %s2047_s25 }
 0x237   : > { %v889_v24 = vld [vmem:[#allocation2] sm:$0xff] }
 0x238   : > { %859 = vrot.lane.b32.xlu0 %v846_v42, %s2616_s19  ;;  %864 = vrot.lane.b32.xlu2 %v846_v42, %s2618_s23  ;;  %v2318_v32 = vand.u32 4294901760, %v889_v24 }
 0x239   : > { %869 = vrot.lane.b32.xlu1 %v846_v42, %s2048_s26 }
 0x240   : > { %1313 = vperm.xlu0 %2028, %v1307_v1   ;;  %849 = vrot.lane.b32.xlu2 %v846_v42, %s2042_s20  ;;  %v1145_v1 = vsub.f32 %v889_v24, %v2318_v32 }
 0x241   : > { %854 = vrot.lane.b32.xlu1 %v846_v42, %s2049_s29 }
 0x242   : > { %v1146_v49 = vand.u32 4294901760, %v1145_v1 }
 0x249   : > { %1319 = vperm.xlu1 %2029, %v1308_v43   ;;  %v1083_v43 = vsub.f32 %v1081_v25, %v1082_v34 }
 0x24b   : > { %v1084_v50 = vand.u32 4294901760, %v1083_v43 }
 0x28a   : > { %v880_v48 = vpop.permute.xlu2 %879 }
 0x28b   : > { %883 = vst.msk [vmem:[#allocation2 + $0x38] sm:$0xff] %vm882_vm1, %v880_v48 }
 0x292   : > { %v865_v52 = vpop.permute.xlu2 %864  ;;  %v896_v56 = vld [vmem:[#allocation2 + $0x38] sm:$0xff] }
 0x293   : > { %868 = vst.msk [vmem:[#allocation2 + $0x20] sm:$0xff] %vm867_vm2, %v865_v52  ;;  %v2253_v57 = vand.u32 4294901760, %v896_v56 }
 0x295   : > { %v2256_v60 = vsub.f32 %v896_v56, %v2253_v57 }
 0x297   : > { %v1104_v7 = vand.u32 4294901760, %v2256_v60 }
 0x299   : > { %v1105_v13 = vsub.f32 %v2256_v60, %v1104_v7 }
 0x29a   : > { %v850_v53 = vpop.permute.xlu2 %849  ;;  %v893_v0 = vld [vmem:[#allocation2 + $0x20] sm:$0xff] }
 0x29b   : > { %853 = vst.msk [vmem:[#allocation2 + $0x8] sm:$0xff] %vm852_vm3, %v850_v53  ;;  %v2275_v6 = vand.u32 4294901760, %v893_v0  ;;  %v1106_v26 = vand.u32 4294901760, %v1105_v13 }
 0x29d   : > { %v2295_v15 = vsub.f32 %v893_v0, %v2275_v6 }
 0x29f   : > { %v1122_v29 = vand.u32 4294901760, %v2295_v15 }
 0x2a1   : > { %v1123_v36 = vsub.f32 %v2295_v15, %v1122_v29 }
 0x2a2   : > { %v875_v54 = vpop.permute.xlu0 %874  ;;  %v890_v19 = vld [vmem:[#allocation2 + $0x8] sm:$0xff] }
 0x2a3   : > { %878 = vst.msk [vmem:[#allocation2 + $0x30] sm:$0xff] %vm877_vm4, %v875_v54  ;;  %v885_v55 = vpop.permute.xlu1 %884  ;;  %v2313_v28 = vand.u32 4294901760, %v890_v19  ;;  %v1124_v44 = vand.u32 4294901760, %v1123_v36  ;;  %v1147_v54 = vsub.f32 %v1145_v1, %v1146_v49 }
 0x2a4   : > { %888 = vst.msk [vmem:[#allocation2 + $0x40] sm:$0xff] %vm887_vm5, %v885_v55 }
 0x2a5   : > { %v1139_v37 = vsub.f32 %v890_v19, %v2313_v28  ;;  %v1148_v56 = vand.u32 4294901760, %v1147_v54 }
 0x2a7   : > { %v1140_v46 = vand.u32 4294901760, %v1139_v37 }
 0x2a9   : > { %v1141_v52 = vsub.f32 %v1139_v37, %v1140_v46 }
 0x2aa   : > { %v860_v58 = vpop.permute.xlu0 %859  ;;  %v895_v59 = vld [vmem:[#allocation2 + $0x30] sm:$0xff] }
 0x2ab   : > { %863 = vst.msk [vmem:[#allocation2 + $0x18] sm:$0xff] %vm862_vm6, %v860_v58  ;;  %v870_v61 = vpop.permute.xlu1 %869  ;;  %v897_v62 = vld [vmem:[#allocation2 + $0x40] sm:$0xff]  ;;  %v2259_v63 = vand.u32 4294901760, %v895_v59  ;;  %v1142_v55 = vand.u32 4294901760, %v1141_v52  ;;  %v928_v58 = vpop.f32.mrf.mxu0 }
 0x2ac   : > { %873 = vst.msk [vmem:[#allocation2 + $0x28] sm:$0xff] %vm872_vm7, %v870_v61  ;;  %v2265_v3 = vand.u32 4294901760, %v897_v62 }
 0x2ad   : > { %v2268_v4 = vsub.f32 %v895_v59, %v2259_v63 }
 0x2ae   : > { %1063 = vmatpush.msra.mxu2 %v2265_v3  ;;  %1203 = vmatpush.msra.mxu1 %v2265_v3  ;;  %v2273_v5 = vsub.f32 %v897_v62, %v2265_v3  ;;  %v1002_v62 = vpop.f32.mrf.mxu3 }
 0x2af   : > { %v1110_v10 = vand.u32 4294901760, %v2268_v4 }
 0x2b0   : > { %1065 = vmatpush.msra.mxu2 %v2253_v57  ;;  %1164 = vmatpush.msra.mxu0 %v2273_v5  ;;  %v1098_v9 = vand.u32 4294901760, %v2273_v5 }
 0x2b1   : > { %1205 = vmatpush.msra.mxu1 %v2253_v57  ;;  %v1111_v22 = vsub.f32 %v2268_v4, %v1110_v10 }
 0x2b2   : > { %1067 = vmatpush.msra.mxu2 %v2259_v63  ;;  %1167 = vmatpush.msra.mxu0 %v2256_v60  ;;  %v1099_v12 = vsub.f32 %v2273_v5, %v1098_v9  ;;  %v892_v14 = vld [vmem:[#allocation2 + $0x18] sm:$0xff]  ;;  %v978_v60 = vpop.f32.mrf.mxu2 }
 0x2b3   : > { %1207 = vmatpush.msra.mxu1 %v2259_v63  ;;  %v855_v16 = vpop.permute.xlu1 %854  ;;  %v894_v17 = vld [vmem:[#allocation2 + $0x28] sm:$0xff]  ;;  %v2298_v18 = vand.u32 4294901760, %v892_v14  ;;  %v1112_v30 = vand.u32 4294901760, %v1111_v22  ;;  %v1026_v0 = vpop.f32.mrf.mxu0 }
 0x2b4   : > { %858 = vst.msk [vmem:[#allocation2 + $0x10] sm:$0xff] %vm857_vm9, %v855_v16  ;;  %1170 = vmatpush.msra.mxu0 %v2268_v4  ;;  %v2302_v20 = vand.u32 4294901760, %v894_v17  ;;  %v1100_v21 = vand.u32 4294901760, %v1099_v12 }
 0x2b5   : > { %v2308_v23 = vsub.f32 %v892_v14, %v2298_v18 }
 0x2b6   : > { %1069 = vmatpush.msra.mxu2 %v2302_v20  ;;  %1101 = vmatpush.msra.mxu3 %v1100_v21  ;;  %v1115_v27 = vsub.f32 %v894_v17, %v2302_v20  ;;  %v1314_v17 = vpop.permute.xlu0 %1313 }
 0x2b7   : > { %1209 = vmatpush.msra.mxu1 %v2302_v20  ;;  %v1128_v33 = vand.u32 4294901760, %v2308_v23 }
 0x2b8   : > { %1071 = vmatpush.msra.mxu2 %v2275_v6  ;;  %1107 = vmatpush.msra.mxu3 %v1106_v26  ;;  %v1116_v31 = vand.u32 4294901760, %v1115_v27  ;;  %v1310_v26 = vld [vmem:[%s2614_s15] sm:$0xff] }
 0x2b9   : > { %1173 = vmatpush.msra.mxu0 %v1115_v27  ;;  %1211 = vmatpush.msra.mxu1 %v2275_v6  ;;  %v1129_v42 = vsub.f32 %v2308_v23, %v1128_v33 }
 0x2ba   : > { %1073 = vmatpush.msra.mxu2 %v2298_v18  ;;  %1113 = vmatpush.msra.mxu3 %v1112_v30  ;;  %v1117_v35 = vsub.f32 %v1115_v27, %v1116_v31 }
 0x2bb   : > { %1176 = vmatpush.msra.mxu0 %v2295_v15  ;;  %1213 = vmatpush.msra.mxu1 %v2298_v18  ;;  %v891_v38 = vld [vmem:[#allocation2 + $0x10] sm:$0xff]  ;;  %v1130_v47 = vand.u32 4294901760, %v1129_v42  ;;  %v1320_v19 = vpop.permute.xlu1 %1319 }
 0x2bc   : > { %v1074_v40 = vand.u32 4294901760, %v891_v38  ;;  %v1118_v41 = vand.u32 4294901760, %v1117_v35 }
 0x2bd   : > { %1179 = vmatpush.msra.mxu0 %v2308_v23 }
 0x2be   : > { %1075 = vmatpush.msra.mxu2 %v1074_v40  ;;  %1119 = vmatpush.msra.mxu3 %v1118_v41  ;;  %v1133_v45 = vsub.f32 %v891_v38, %v1074_v40  ;;  %v1305_v38 = vld [vmem:[%s2609_s10] sm:$0xff] }
 0x2bf   : > { %1215 = vmatpush.msra.mxu1 %v1074_v40 }
 0x2c0   : > { %1077 = vmatpush.msra.mxu2 %v2313_v28  ;;  %1125 = vmatpush.msra.mxu3 %v1124_v44  ;;  %v1134_v48 = vand.u32 4294901760, %v1133_v45  ;;  %v1375_v44 = vsel %vm1051_vm8, %v1305_v38, 0 }
 0x2c1   : > { %1182 = vmatpush.msra.mxu0 %v1133_v45  ;;  %1217 = vmatpush.msra.mxu1 %v2313_v28 }
 0x2c2   : > { %1079 = vmatpush.msra.mxu2 %v2318_v32  ;;  %1131 = vmatpush.msra.mxu3 %v1130_v47  ;;  %v1135_v51 = vsub.f32 %v1133_v45, %v1134_v48 }
 0x2c3   : > { %1185 = vmatpush.msra.mxu0 %v1139_v37  ;;  %1219 = vmatpush.msra.mxu1 %v2318_v32 }
 0x2c4   : > { %1237 = vmatpush.msrb.mxu2 %v1098_v9  ;;  %v1136_v53 = vand.u32 4294901760, %v1135_v51  ;;  %1223 = vmatmul.f32.vlgmr.msra.gmra.mxu1 %v1082_v34 }
 0x2c5   : > { %1188 = vmatpush.msra.mxu0 %v1145_v1  ;;  %1085 = vmatmul.f32.vlgmr.msra.gmra.mxu2 %v1084_v50 }
 0x2c6   : > { %1241 = vmatpush.msrb.mxu2 %v1104_v7  ;;  %1137 = vmatpush.msra.mxu3 %v1136_v53 }
 0x2c7   : > { %1191 = vmatmul.f32.vlgmr.msra.gmra.mxu0 %v1081_v25  ;;  %v1309_v25 = vld [vmem:[%s2613_s14] sm:$0xff] }
 0x2c8   : > { %1245 = vmatpush.msrb.mxu2 %v1110_v10  ;;  %1143 = vmatpush.msra.mxu3 %v1142_v55 }
 0x2ca   : > { %1249 = vmatpush.msrb.mxu2 %v1116_v31  ;;  %1149 = vmatpush.msra.mxu3 %v1148_v56 }
 0x2cb   : > { %1151 = vmatmul.f32.vlgmr.msra.gmra.mxu3 %v2284_v11 }
 0x2cc   : > { %1283 = vmatpush.msrb.mxu3 %v2265_v3  ;;  %1253 = vmatpush.msrb.mxu2 %v1122_v29 }
 0x2ce   : > { %1285 = vmatpush.msrb.mxu3 %v2253_v57  ;;  %1257 = vmatpush.msrb.mxu2 %v1128_v33  ;;  %v954_v57 = vpop.f32.mrf.mxu1 }
 0x2cf   : > { %v955_v59 = vadd.f32 %v954_v57, %v928_v58 }
 0x2d0   : > { %1287 = vmatpush.msrb.mxu3 %v2259_v63  ;;  %1261 = vmatpush.msrb.mxu2 %v1134_v48 }
 0x2d1   : > { %v979_v61 = vadd.f32 %v978_v60, %v955_v59 }
 0x2d2   : > { %1289 = vmatpush.msrb.mxu3 %v2302_v20  ;;  %1265 = vmatpush.msrb.mxu2 %v1140_v46 }
 0x2d3   : > { %v1003_v63 = vadd.f32 %v1002_v62, %v979_v61 }
 0x2d4   : > { %1291 = vmatpush.msrb.mxu3 %v2275_v6  ;;  %1269 = vmatpush.msrb.mxu2 %v1146_v49  ;;  %v2408_v49 = vand.u32 4294901760, %v1375_v44 }
 0x2d5   : > { %1271 = vmatmul.f32.vlgmr.msrb.gmra.mxu2 %v2284_v11  ;;  %v1027_v2 = vadd.f32 %v1026_v0, %v1003_v63 }
 0x2d6   : > { %1293 = vmatpush.msrb.mxu3 %v2298_v18  ;;  %v1048_v3 = vpop.f32.mrf.mxu1  ;;  %v1403_v63 = vsub.f32 %v1375_v44, %v2408_v49 }
 0x2d7   : > { %v1049_v4 = vadd.f32 %v1048_v3, %v1027_v2 }
 0x2d8   : > { %1295 = vmatpush.msrb.mxu3 %v1074_v40 }
 0x2da   : > { %1297 = vmatpush.msrb.mxu3 %v2313_v28 }
 0x2dc   : > { %1299 = vmatpush.msrb.mxu3 %v2318_v32 }
 0x2dd   : > { %1301 = vmatmul.f32.vlgmr.msrb.gmra.mxu3 %v2284_v11 }
 0x341   : > { %v1224_v12 = vpop.f32.mrf.mxu1 }
 0x344   : > { %v1192_v9 = vpop.f32.mrf.mxu0 }
 0x348   : > { %v1086_v5 = vpop.f32.mrf.mxu2 }
 0x349   : > { %v1087_v6 = vadd.f32 %v1086_v5, %v1049_v4 }
 0x34e   : > { %v1152_v7 = vpop.f32.mrf.mxu3 }
 0x34f   : > { %v1153_v8 = vadd.f32 %v1152_v7, %v1087_v6 }
 0x351   : > { %v1193_v10 = vadd.f32 %v1192_v9, %v1153_v8  ;;  %v1404_v8 = vand.u32 4294901760, %v1403_v63 }
 0x353   : > { %v1225_v13 = vadd.f32 %v1224_v12, %v1193_v10 }
 0x358   : > { %v1272_v11 = vpop.f32.mrf.mxu2 }
 0x359   : > { %v1273_v14 = vadd.f32 %v1272_v11, %v1225_v13 }
 0x360   : > { %v1302_v15 = vpop.f32.mrf.mxu3 }
 0x361   : > { %v2351_v16 = vadd.f32 %v1302_v15, %v1273_v14 }
 0x363   : > { %v1316_v18 = vmul.f32 %v1314_v17, %v2351_v16 }
 0x365   : > { %v1322_v20 = vadd.f32 %v1320_v19, %v1316_v18 }
 0x367   : > { %v1323_v21 = vmax.f32 %v1322_v20, 0.0  ;;  %v1405_v20 = vsub.f32 %v1403_v63, %v1404_v8 }
 0x369   : > { %1325 = vrot.lane.b32.xlu2 %v1323_v21, %s2044_s30 }
 0x3c3   : > { %v1326_v22 = vpop.permute.xlu2 %1325 }
 0x3c4   : > { %v1328_v23 = vsel %vm2223_vm13, %v1326_v22, 0.0 }
 0x3c5   : > { %1329 = vst.msk [vmem:[#allocation3] sm:$0xff] %vm844_vm14, %v1328_v23 }
 0x3cc   : > { %v1330_v24 = vld [vmem:[#allocation3] sm:$0xff] }
 0x3cd   : > { %1353 = vrot.lane.b32.xlu2 %v1330_v24, %s2045_s18  ;;  %1331 = vst.msk [vmem:[#allocation2] sm:$0xff] %vm520_vm0, %v1330_v24  ;;  %1357 = vrot.lane.b32.xlu1 %v1330_v24, %s2046_s24 }
 0x3ce   : > { %1361 = vrot.lane.b32.xlu0 %v1330_v24, %s2047_s25 }
 0x3d4   : > { %v1365_v62 = vld [vmem:[#allocation2] sm:$0xff] }
 0x3d5   : > { %1341 = vrot.lane.b32.xlu2 %v1330_v24, %s2624_s27  ;;  %1345 = vrot.lane.b32.xlu1 %v1330_v24, %s2625_s28  ;;  %v2441_v6 = vand.u32 4294901760, %v1365_v62 }
 0x3d6   : > { %1349 = vrot.lane.b32.xlu0 %v1330_v24, %s2048_s26 }
 0x3d7   : > { %v1467_v18 = vsub.f32 %v1365_v62, %v2441_v6 }
 0x3dd   : > { %1629 = vperm.xlu2 %2030, %v1309_v25   ;;  %1333 = vrot.lane.b32.xlu1 %v1330_v24, %s2042_s20 }
 0x3de   : > { %1337 = vrot.lane.b32.xlu0 %v1330_v24, %s2049_s29 }
 0x3e6   : > { %1635 = vperm.xlu0 %2028, %v1310_v26   ;;  %v1468_v26 = vand.u32 4294901760, %v1467_v18 }
 0x427   : > { %v1354_v27 = vpop.permute.xlu2 %1353 }
 0x428   : > { %1356 = vst.msk [vmem:[#allocation2 + $0x30] sm:$0xff] %vm877_vm4, %v1354_v27  ;;  %v1406_v27 = vand.u32 4294901760, %v1405_v20 }
 0x42f   : > { %v1342_v28 = vpop.permute.xlu2 %1341  ;;  %v1371_v31 = vld [vmem:[#allocation2 + $0x30] sm:$0xff] }
 0x430   : > { %1344 = vst.msk [vmem:[#allocation2 + $0x18] sm:$0xff] %vm862_vm6, %v1342_v28  ;;  %v2377_v32 = vand.u32 4294901760, %v1371_v31 }
 0x432   : > { %v2389_v41 = vsub.f32 %v1371_v31, %v2377_v32  ;;  %v1469_v31 = vsub.f32 %v1467_v18, %v1468_v26 }
 0x434   : > { %v1432_v48 = vand.u32 4294901760, %v2389_v41 }
 0x436   : > { %v1433_v59 = vsub.f32 %v2389_v41, %v1432_v48 }
 0x437   : > { %v1368_v1 = vld [vmem:[#allocation2 + $0x18] sm:$0xff] }
 0x438   : > { %v2404_v47 = vand.u32 4294901760, %v1368_v1  ;;  %v1434_v4 = vand.u32 4294901760, %v1433_v59 }
 0x43a   : > { %v2430_v60 = vsub.f32 %v1368_v1, %v2404_v47 }
 0x43c   : > { %v1450_v7 = vand.u32 4294901760, %v2430_v60 }
 0x43e   : > { %v1451_v17 = vsub.f32 %v2430_v60, %v1450_v7 }
 0x43f   : > { %v1358_v29 = vpop.permute.xlu1 %1357 }
 0x440   : > { %1360 = vst.msk [vmem:[#allocation2 + $0x38] sm:$0xff] %vm882_vm1, %v1358_v29  ;;  %v1362_v30 = vpop.permute.xlu0 %1361  ;;  %v1452_v24 = vand.u32 4294901760, %v1451_v17 }
 0x441   : > { %1364 = vst.msk [vmem:[#allocation2 + $0x40] sm:$0xff] %vm887_vm5, %v1362_v30 }
 0x447   : > { %v1346_v33 = vpop.permute.xlu1 %1345  ;;  %v1372_v34 = vld [vmem:[#allocation2 + $0x38] sm:$0xff] }
 0x448   : > { %1348 = vst.msk [vmem:[#allocation2 + $0x20] sm:$0xff] %vm867_vm2, %v1346_v33  ;;  %v1350_v35 = vpop.permute.xlu0 %1349  ;;  %v1373_v36 = vld [vmem:[#allocation2 + $0x40] sm:$0xff]  ;;  %v2380_v37 = vand.u32 4294901760, %v1372_v34 }
 0x449   : > { %1352 = vst.msk [vmem:[#allocation2 + $0x28] sm:$0xff] %vm872_vm7, %v1350_v35  ;;  %v2386_v40 = vand.u32 4294901760, %v1373_v36 }
 0x44a   : > { %v2392_v42 = vsub.f32 %v1372_v34, %v2380_v37  ;;  %v1470_v34 = vand.u32 4294901760, %v1469_v31 }
 0x44b   : > { %1385 = vmatpush.msrb.mxu0 %v2386_v40  ;;  %1525 = vmatpush.msra.mxu3 %v2386_v40  ;;  %v2397_v43 = vsub.f32 %v1373_v36, %v2386_v40 }
 0x44c   : > { %v1426_v45 = vand.u32 4294901760, %v2392_v42 }
 0x44d   : > { %1387 = vmatpush.msrb.mxu0 %v2380_v37  ;;  %1486 = vmatpush.msra.mxu2 %v2397_v43  ;;  %v1420_v46 = vand.u32 4294901760, %v2397_v43 }
 0x44e   : > { %1527 = vmatpush.msra.mxu3 %v2380_v37  ;;  %v1427_v53 = vsub.f32 %v2392_v42, %v1426_v45 }
 0x44f   : > { %1389 = vmatpush.msrb.mxu0 %v2377_v32  ;;  %1489 = vmatpush.msra.mxu2 %v2392_v42  ;;  %v1334_v50 = vpop.permute.xlu1 %1333  ;;  %v1421_v51 = vsub.f32 %v2397_v43, %v1420_v46  ;;  %v1369_v52 = vld [vmem:[#allocation2 + $0x20] sm:$0xff] }
 0x450   : > { %1529 = vmatpush.msra.mxu3 %v2377_v32  ;;  %1336 = vst.msk [vmem:[#allocation2 + $0x8] sm:$0xff] %vm852_vm3, %v1334_v50  ;;  %v1338_v54 = vpop.permute.xlu0 %1337  ;;  %v1370_v55 = vld [vmem:[#allocation2 + $0x28] sm:$0xff]  ;;  %v2420_v56 = vand.u32 4294901760, %v1369_v52  ;;  %v1428_v0 = vand.u32 4294901760, %v1427_v53 }
 0x451   : > { %1340 = vst.msk [vmem:[#allocation2 + $0x10] sm:$0xff] %vm857_vm9, %v1338_v54  ;;  %1492 = vmatpush.msra.mxu2 %v2389_v41  ;;  %v2424_v57 = vand.u32 4294901760, %v1370_v55  ;;  %v1422_v58 = vand.u32 4294901760, %v1421_v51 }
 0x452   : > { %v2433_v61 = vsub.f32 %v1369_v52, %v2420_v56 }
 0x453   : > { %1391 = vmatpush.msrb.mxu0 %v2424_v57  ;;  %1423 = vmatpush.msrb.mxu1 %v1422_v58  ;;  %v1437_v2 = vsub.f32 %v1370_v55, %v2424_v57 }
 0x454   : > { %1531 = vmatpush.msra.mxu3 %v2424_v57  ;;  %v1444_v3 = vand.u32 4294901760, %v2433_v61 }
 0x455   : > { %1393 = vmatpush.msrb.mxu0 %v2420_v56  ;;  %1429 = vmatpush.msrb.mxu1 %v1428_v0  ;;  %v1438_v5 = vand.u32 4294901760, %v1437_v2 }
 0x456   : > { %1495 = vmatpush.msra.mxu2 %v1437_v2  ;;  %1533 = vmatpush.msra.mxu3 %v2420_v56  ;;  %v1445_v12 = vsub.f32 %v2433_v61, %v1444_v3 }
 0x457   : > { %1395 = vmatpush.msrb.mxu0 %v2404_v47  ;;  %1435 = vmatpush.msrb.mxu1 %v1434_v4  ;;  %v1439_v9 = vsub.f32 %v1437_v2, %v1438_v5  ;;  %v1366_v10 = vld [vmem:[#allocation2 + $0x8] sm:$0xff]  ;;  %v1306_v2 = vld [vmem:[%s2610_s11] sm:$0xff] }
 0x458   : > { %1498 = vmatpush.msra.mxu2 %v2433_v61  ;;  %1535 = vmatpush.msra.mxu3 %v2404_v47  ;;  %v1367_v13 = vld [vmem:[#allocation2 + $0x10] sm:$0xff]  ;;  %v1398_v11 = vand.u32 4294901760, %v1366_v10  ;;  %v1446_v21 = vand.u32 4294901760, %v1445_v12 }
 0x459   : > { %v1396_v14 = vand.u32 4294901760, %v1367_v13  ;;  %v1440_v15 = vand.u32 4294901760, %v1439_v9 }
 0x45a   : > { %1501 = vmatpush.msra.mxu2 %v2430_v60  ;;  %v1461_v19 = vsub.f32 %v1366_v10, %v1398_v11 }
 0x45b   : > { %1397 = vmatpush.msrb.mxu0 %v1396_v14  ;;  %1441 = vmatpush.msrb.mxu1 %v1440_v15  ;;  %v1455_v22 = vsub.f32 %v1367_v13, %v1396_v14 }
 0x45c   : > { %1537 = vmatpush.msra.mxu3 %v1396_v14  ;;  %v1462_v23 = vand.u32 4294901760, %v1461_v19 }
 0x45d   : > { %1399 = vmatpush.msrb.mxu0 %v1398_v11  ;;  %1447 = vmatpush.msrb.mxu1 %v1446_v21  ;;  %v1456_v25 = vand.u32 4294901760, %v1455_v22 }
 0x45e   : > { %1504 = vmatpush.msra.mxu2 %v1455_v22  ;;  %1539 = vmatpush.msra.mxu3 %v1398_v11  ;;  %v1463_v29 = vsub.f32 %v1461_v19, %v1462_v23 }
 0x45f   : > { %1401 = vmatpush.msrb.mxu0 %v2441_v6  ;;  %1453 = vmatpush.msrb.mxu1 %v1452_v24  ;;  %v1457_v28 = vsub.f32 %v1455_v22, %v1456_v25 }
 0x460   : > { %1507 = vmatpush.msra.mxu2 %v1461_v19  ;;  %1541 = vmatpush.msra.mxu3 %v2441_v6  ;;  %v1464_v33 = vand.u32 4294901760, %v1463_v29 }
 0x461   : > { %1559 = vmatpush.msra.mxu0 %v1420_v46  ;;  %v1458_v30 = vand.u32 4294901760, %v1457_v28  ;;  %1545 = vmatmul.f32.vlgmr.msra.gmra.mxu3 %v1404_v8  ;;  %v1691_v8 = vsel %vm1051_vm8, %v1306_v2, 0 }
 0x462   : > { %1510 = vmatpush.msra.mxu2 %v1467_v18  ;;  %1407 = vmatmul.f32.vlgmr.msrb.gmra.mxu0 %v1406_v27 }
 0x463   : > { %1563 = vmatpush.msra.mxu0 %v1426_v45  ;;  %1459 = vmatpush.msrb.mxu1 %v1458_v30  ;;  %v1630_v45 = vpop.permute.xlu2 %1629 }
 0x464   : > { %1513 = vmatmul.f32.vlgmr.msra.gmra.mxu2 %v1403_v63 }
 0x465   : > { %1567 = vmatpush.msra.mxu0 %v1432_v48  ;;  %1465 = vmatpush.msrb.mxu1 %v1464_v33 }
 0x467   : > { %1571 = vmatpush.msra.mxu0 %v1438_v5  ;;  %1471 = vmatpush.msrb.mxu1 %v1470_v34 }
 0x468   : > { %1473 = vmatmul.f32.vlgmr.msrb.gmra.mxu1 %v2408_v49 }
 0x469   : > { %1605 = vmatpush.msra.mxu1 %v2386_v40  ;;  %1575 = vmatpush.msra.mxu0 %v1444_v3 }
 0x46b   : > { %1607 = vmatpush.msra.mxu1 %v2380_v37  ;;  %1579 = vmatpush.msra.mxu0 %v1450_v7 }
 0x46d   : > { %1609 = vmatpush.msra.mxu1 %v2377_v32  ;;  %1583 = vmatpush.msra.mxu0 %v1456_v25 }
 0x46f   : > { %1611 = vmatpush.msra.mxu1 %v2424_v57  ;;  %1587 = vmatpush.msra.mxu0 %v1462_v23 }
 0x471   : > { %1613 = vmatpush.msra.mxu1 %v2420_v56  ;;  %1591 = vmatpush.msra.mxu0 %v1468_v26 }
 0x472   : > { %1593 = vmatmul.f32.vlgmr.msra.gmra.mxu0 %v2408_v49 }
 0x473   : > { %1615 = vmatpush.msra.mxu1 %v2404_v47  ;;  %v1636_v47 = vpop.permute.xlu0 %1635 }
 0x475   : > { %1617 = vmatpush.msra.mxu1 %v1396_v14  ;;  %v2523_v14 = vand.u32 4294901760, %v1691_v8 }
 0x477   : > { %1619 = vmatpush.msra.mxu1 %v1398_v11  ;;  %v1719_v25 = vsub.f32 %v1691_v8, %v2523_v14 }
 0x479   : > { %1621 = vmatpush.msra.mxu1 %v2441_v6 }
 0x47a   : > { %1623 = vmatmul.f32.vlgmr.msra.gmra.mxu1 %v2408_v49 }
 0x4df   : > { %v1408_v36 = vpop.f32.mrf.mxu0 }
 0x4e4   : > { %v1546_v40 = vpop.f32.mrf.mxu3 }
 0x4e5   : > { %v1474_v35 = vpop.f32.mrf.mxu1 }
 0x4e6   : > { %v1475_v32 = vadd.f32 %v1474_v35, %v1408_v36 }
 0x4e7   : > { %v1514_v37 = vpop.f32.mrf.mxu2 }
 0x4e8   : > { %v1515_v38 = vadd.f32 %v1514_v37, %v1475_v32  ;;  %v1720_v32 = vand.u32 4294901760, %v1719_v25 }
 0x4ea   : > { %v1547_v41 = vadd.f32 %v1546_v40, %v1515_v38 }
 0x4ef   : > { %v1594_v42 = vpop.f32.mrf.mxu0 }
 0x4f0   : > { %v1595_v1 = vadd.f32 %v1594_v42, %v1547_v41 }
 0x4f7   : > { %v1624_v43 = vpop.f32.mrf.mxu1 }
 0x4f8   : > { %v1625_v44 = vadd.f32 %v1624_v43, %v1595_v1 }
 0x4fa   : > { %v1632_v46 = vmul.f32 %v1630_v45, %v1625_v44  ;;  %v1721_v45 = vsub.f32 %v1719_v25, %v1720_v32 }
 0x4fc   : > { %v1638_v48 = vadd.f32 %v1636_v47, %v1632_v46 }
 0x4fe   : > { %v1639_v50 = vmax.f32 %v1638_v48, 0.0 }
 0x500   : > { %1641 = vrot.lane.b32.xlu1 %v1639_v50, %s2044_s30 }
 0x572   : > { %v1642_v51 = vpop.permute.xlu1 %1641 }
 0x573   : > { %v1644_v49 = vsel %vm2223_vm13, %v1642_v51, 0.0 }
 0x574   : > { %1645 = vst.msk [vmem:[#allocation3] sm:$0xff] %vm844_vm14, %v1644_v49 }
 0x57b   : > { %v1646_v52 = vld [vmem:[#allocation3] sm:$0xff] }
 0x57c   : > { %1669 = vrot.lane.b32.xlu1 %v1646_v52, %s2045_s18  ;;  %1647 = vst.msk [vmem:[#allocation2] sm:$0xff] %vm520_vm0, %v1646_v52  ;;  %1673 = vrot.lane.b32.xlu0 %v1646_v52, %s2046_s24  ;;  %s2005_s18 = sshll.u32 %s2627_s22, 3 }
 0x57d   : > { %1677 = vrot.lane.b32.xlu2 %v1646_v52, %s2047_s25 }
 0x583   : > { %v1681_v24 = vld [vmem:[#allocation2] sm:$0xff] }
 0x584   : > { %1657 = vrot.lane.b32.xlu1 %v1646_v52, %s2624_s27  ;;  %1661 = vrot.lane.b32.xlu0 %v1646_v52, %s2625_s28  ;;  %v2556_v34 = vand.u32 4294901760, %v1681_v24 }
 0x585   : > { %1665 = vrot.lane.b32.xlu2 %v1646_v52, %s2048_s26  ;;  %s519_s26 = scalar_lea.vmem %s2615_s16, %s2005_s18 }
 0x586   : > { %v1783_v42 = vsub.f32 %v1681_v24, %v2556_v34 }
 0x588   : > { %v1784_v51 = vand.u32 4294901760, %v1783_v42 }
 0x58c   : > { %1649 = vrot.lane.b32.xlu0 %v1646_v52, %s2042_s20 }
 0x58d   : > { %1653 = vrot.lane.b32.xlu2 %v1646_v52, %s2049_s29  ;;  %v1722_v52 = vand.u32 4294901760, %v1721_v45 }
 0x5d7   : > { %v1678_v39 = vpop.permute.xlu2 %1677 }
 0x5d8   : > { %1680 = vst.msk [vmem:[#allocation2 + $0x40] sm:$0xff] %vm887_vm5, %v1678_v39 }
 0x5df   : > { %v1666_v53 = vpop.permute.xlu2 %1665  ;;  %v1689_v54 = vld [vmem:[#allocation2 + $0x40] sm:$0xff] }
 0x5e0   : > { %1668 = vst.msk [vmem:[#allocation2 + $0x28] sm:$0xff] %vm872_vm7, %v1666_v53  ;;  %v2485_v55 = vand.u32 4294901760, %v1689_v54 }
 0x5e2   : > { %1701 = vmatpush.msrb.mxu2 %v2485_v55  ;;  %1841 = vmatpush.msrb.mxu1 %v2485_v55  ;;  %v2490_v56 = vsub.f32 %v1689_v54, %v2485_v55 }
 0x5e4   : > { %1802 = vmatpush.msrb.mxu0 %v2490_v56  ;;  %v1736_v57 = vand.u32 4294901760, %v2490_v56 }
 0x5e6   : > { %v1737_v58 = vsub.f32 %v2490_v56, %v1736_v57 }
 0x5e7   : > { %v1654_v59 = vpop.permute.xlu2 %1653  ;;  %v1686_v63 = vld [vmem:[#allocation2 + $0x28] sm:$0xff] }
 0x5e8   : > { %1656 = vst.msk [vmem:[#allocation2 + $0x10] sm:$0xff] %vm857_vm9, %v1654_v59  ;;  %v1738_v60 = vand.u32 4294901760, %v1737_v58  ;;  %v2500_v0 = vand.u32 4294901760, %v1686_v63  ;;  %v1785_v58 = vsub.f32 %v1783_v42, %v1784_v51 }
 0x5ea   : > { %1739 = vmatpush.msrb.mxu3 %v1738_v60  ;;  %v2513_v10 = vsub.f32 %v1686_v63, %v2500_v0  ;;  %v1786_v60 = vand.u32 4294901760, %v1785_v58 }
 0x5ec   : > { %v1754_v19 = vand.u32 4294901760, %v2513_v10 }
 0x5ee   : > { %v1670_v61 = vpop.permute.xlu1 %1669  ;;  %v1674_v62 = vpop.permute.xlu0 %1673  ;;  %v1755_v30 = vsub.f32 %v2513_v10, %v1754_v19 }
 0x5ef   : > { %1672 = vst.msk [vmem:[#allocation2 + $0x30] sm:$0xff] %vm877_vm4, %v1670_v61  ;;  %v1683_v13 = vld [vmem:[#allocation2 + $0x10] sm:$0xff] }
 0x5f0   : > { %1676 = vst.msk [vmem:[#allocation2 + $0x38] sm:$0xff] %vm882_vm1, %v1674_v62  ;;  %v2529_v18 = vand.u32 4294901760, %v1683_v13  ;;  %v1756_v38 = vand.u32 4294901760, %v1755_v30 }
 0x5f2   : > { %v2553_v31 = vsub.f32 %v1683_v13, %v2529_v18 }
 0x5f4   : > { %v1772_v41 = vand.u32 4294901760, %v2553_v31 }
 0x5f6   : > { %v1658_v3 = vpop.permute.xlu1 %1657  ;;  %v1662_v4 = vpop.permute.xlu0 %1661  ;;  %v1687_v5 = vld [vmem:[#allocation2 + $0x30] sm:$0xff]  ;;  %v1773_v48 = vsub.f32 %v2553_v31, %v1772_v41 }
 0x5f7   : > { %1660 = vst.msk [vmem:[#allocation2 + $0x18] sm:$0xff] %vm862_vm6, %v1658_v3  ;;  %v1688_v6 = vld [vmem:[#allocation2 + $0x38] sm:$0xff]  ;;  %v2506_v7 = vand.u32 4294901760, %v1687_v5 }
 0x5f8   : > { %1664 = vst.msk [vmem:[#allocation2 + $0x20] sm:$0xff] %vm867_vm2, %v1662_v4  ;;  %v2510_v9 = vand.u32 4294901760, %v1688_v6  ;;  %v1774_v53 = vand.u32 4294901760, %v1773_v48 }
 0x5f9   : > { %v2516_v12 = vsub.f32 %v1687_v5, %v2506_v7 }
 0x5fa   : > { %1703 = vmatpush.msrb.mxu2 %v2510_v9  ;;  %1843 = vmatpush.msrb.mxu1 %v2510_v9  ;;  %v2521_v11 = vsub.f32 %v1688_v6, %v2510_v9 }
 0x5fb   : > { %v1748_v15 = vand.u32 4294901760, %v2516_v12 }
 0x5fc   : > { %1705 = vmatpush.msrb.mxu2 %v2506_v7  ;;  %1805 = vmatpush.msrb.mxu0 %v2521_v11  ;;  %v1742_v17 = vand.u32 4294901760, %v2521_v11 }
 0x5fd   : > { %1845 = vmatpush.msrb.mxu1 %v2506_v7  ;;  %v1749_v23 = vsub.f32 %v2516_v12, %v1748_v15 }
 0x5fe   : > { %1707 = vmatpush.msrb.mxu2 %v2500_v0  ;;  %1808 = vmatpush.msrb.mxu0 %v2516_v12  ;;  %v1650_v20 = vpop.permute.xlu0 %1649  ;;  %v1743_v21 = vsub.f32 %v2521_v11, %v1742_v17  ;;  %v1684_v22 = vld [vmem:[#allocation2 + $0x18] sm:$0xff] }
 0x5ff   : > { %1847 = vmatpush.msrb.mxu1 %v2500_v0  ;;  %1652 = vst.msk [vmem:[#allocation2 + $0x8] sm:$0xff] %vm852_vm3, %v1650_v20  ;;  %v1685_v26 = vld [vmem:[#allocation2 + $0x20] sm:$0xff]  ;;  %v2544_v27 = vand.u32 4294901760, %v1684_v22  ;;  %v1750_v35 = vand.u32 4294901760, %v1749_v23 }
 0x600   : > { %1811 = vmatpush.msrb.mxu0 %v2513_v10  ;;  %v2547_v28 = vand.u32 4294901760, %v1685_v26  ;;  %v1744_v29 = vand.u32 4294901760, %v1743_v21 }
 0x601   : > { %v1765_v33 = vsub.f32 %v1684_v22, %v2544_v27 }
 0x602   : > { %1709 = vmatpush.msrb.mxu2 %v2547_v28  ;;  %1745 = vmatpush.msrb.mxu3 %v1744_v29  ;;  %v1759_v36 = vsub.f32 %v1685_v26, %v2547_v28 }
 0x603   : > { %1849 = vmatpush.msrb.mxu1 %v2547_v28  ;;  %v1766_v37 = vand.u32 4294901760, %v1765_v33 }
 0x604   : > { %1711 = vmatpush.msrb.mxu2 %v2544_v27  ;;  %1751 = vmatpush.msrb.mxu3 %v1750_v35  ;;  %v1760_v40 = vand.u32 4294901760, %v1759_v36 }
 0x605   : > { %1814 = vmatpush.msrb.mxu0 %v1759_v36  ;;  %1851 = vmatpush.msrb.mxu1 %v2544_v27  ;;  %v1767_v44 = vsub.f32 %v1765_v33, %v1766_v37 }
 0x606   : > { %1713 = vmatpush.msrb.mxu2 %v2529_v18  ;;  %1757 = vmatpush.msrb.mxu3 %v1756_v38  ;;  %v1682_v1 = vld [vmem:[#allocation2 + $0x8] sm:$0xff]  ;;  %v1761_v43 = vsub.f32 %v1759_v36, %v1760_v40 }
 0x607   : > { %1817 = vmatpush.msrb.mxu0 %v1765_v33  ;;  %1853 = vmatpush.msrb.mxu1 %v2529_v18  ;;  %v1714_v46 = vand.u32 4294901760, %v1682_v1  ;;  %v1768_v49 = vand.u32 4294901760, %v1767_v44 }
 0x608   : > { %v1762_v47 = vand.u32 4294901760, %v1761_v43 }
 0x609   : > { %1820 = vmatpush.msrb.mxu0 %v2553_v31  ;;  %1715 = vmatpush.msrb.mxu2 %v1714_v46  ;;  %v1777_v50 = vsub.f32 %v1682_v1, %v1714_v46 }
 0x60a   : > { %1763 = vmatpush.msrb.mxu3 %v1762_v47  ;;  %1855 = vmatpush.msrb.mxu1 %v1714_v46 }
 0x60b   : > { %1717 = vmatpush.msrb.mxu2 %v2556_v34  ;;  %1823 = vmatpush.msrb.mxu0 %v1777_v50  ;;  %v1778_v39 = vand.u32 4294901760, %v1777_v50 }
 0x60c   : > { %1769 = vmatpush.msrb.mxu3 %v1768_v49  ;;  %1857 = vmatpush.msrb.mxu1 %v2556_v34 }
 0x60d   : > { %1875 = vmatpush.msra.mxu2 %v1736_v57  ;;  %1826 = vmatpush.msrb.mxu0 %v1783_v42  ;;  %v1779_v54 = vsub.f32 %v1777_v50, %v1778_v39 }
 0x60e   : > { %1775 = vmatpush.msrb.mxu3 %v1774_v53  ;;  %1723 = vmatmul.f32.vlgmr.msrb.gmra.mxu2 %v1722_v52 }
 0x60f   : > { %1879 = vmatpush.msra.mxu2 %v1742_v17  ;;  %v1780_v59 = vand.u32 4294901760, %v1779_v54  ;;  %1829 = vmatmul.f32.vlgmr.msrb.gmra.mxu0 %v1719_v25 }
 0x610   : > { %1861 = vmatmul.f32.vlgmr.msrb.gmra.mxu1 %v1720_v32 }
 0x611   : > { %1883 = vmatpush.msra.mxu2 %v1748_v15  ;;  %1781 = vmatpush.msrb.mxu3 %v1780_v59 }
 0x613   : > { %1887 = vmatpush.msra.mxu2 %v1754_v19  ;;  %1787 = vmatpush.msrb.mxu3 %v1786_v60 }
 0x614   : > { %1789 = vmatmul.f32.vlgmr.msrb.gmra.mxu3 %v2523_v14 }
 0x615   : > { %1921 = vmatpush.msra.mxu3 %v2485_v55  ;;  %1891 = vmatpush.msra.mxu2 %v1760_v40 }
 0x617   : > { %1923 = vmatpush.msra.mxu3 %v2510_v9  ;;  %1895 = vmatpush.msra.mxu2 %v1766_v37 }
 0x619   : > { %1925 = vmatpush.msra.mxu3 %v2506_v7  ;;  %1899 = vmatpush.msra.mxu2 %v1772_v41 }
 0x61b   : > { %1927 = vmatpush.msra.mxu3 %v2500_v0  ;;  %1903 = vmatpush.msra.mxu2 %v1778_v39 }
 0x61d   : > { %1929 = vmatpush.msra.mxu3 %v2547_v28  ;;  %1907 = vmatpush.msra.mxu2 %v1784_v51 }
 0x61e   : > { %1909 = vmatmul.f32.vlgmr.msra.gmra.mxu2 %v2523_v14 }
 0x61f   : > { %1931 = vmatpush.msra.mxu3 %v2544_v27 }
 0x621   : > { %1933 = vmatpush.msra.mxu3 %v2529_v18 }
 0x623   : > { %1935 = vmatpush.msra.mxu3 %v1714_v46 }
 0x625   : > { %1937 = vmatpush.msra.mxu3 %v2556_v34 }
 0x626   : > { %1939 = vmatmul.f32.vlgmr.msra.gmra.mxu3 %v2523_v14 }
 0x68c   : > { %v1830_v61 = vpop.f32.mrf.mxu0 }
 0x68d   : > { %v1862_v63 = vpop.f32.mrf.mxu1 }
 0x691   : > { %v1724_v56 = vpop.f32.mrf.mxu2 }
 0x697   : > { %v1790_v55 = vpop.f32.mrf.mxu3 }
 0x698   : > { %v1791_v57 = vadd.f32 %v1790_v55, %v1724_v56 }
 0x69a   : > { %v1831_v62 = vadd.f32 %v1830_v61, %v1791_v57 }
 0x69c   : > { %v1863_v0 = vadd.f32 %v1862_v63, %v1831_v62 }
 0x6a1   : > { %v1910_v2 = vpop.f32.mrf.mxu2 }
 0x6a2   : > { %v1911_v3 = vadd.f32 %v1910_v2, %v1863_v0 }
 0x6a9   : > { %v1940_v4 = vpop.f32.mrf.mxu3 }
 0x6aa   : > { %v1941_v5 = vadd.f32 %v1940_v4, %v1911_v3 }
 0x6ac   : > { %v1943_v6 = vadd.f32 %v1941_v5, %v2351_v16 }
 0x6ae   : > { %1944 = vst.msk [vmem:[%s519_s26] sm:$0xff] %vm520_vm0, %v1943_v6 }
 0x6af PF: > { %s26_s21 = sadd.s32 1, %s2037_s21  }
 0x6b0   : > { %p23_p4 = scmp.ge.s32.totalorder %s26_s21, 4  }
 0x6b2   :  { %25 = sbr.rel (!%p23_p4) target bundleno = 2 (0x2), region = 114 }

</bundles_post_ra>
